<compile_context>
chip_gen: v6e
topology: v6e:2x2x1
jax: 0.10.0
libtpu: 0.0.40
codegen_flags: <defaults>
</compile_context>

<pallas_src>
import functools

import jax
import jax.numpy as jnp
from jax.experimental import pallas as pl
from jax.experimental.pallas import tpu as pltpu

IN_FEATURES = 2883
HIDDEN = 160
OUT_FEATURES = 5

TILE_M_BF16 = 2048   # 2 x 11.3 MiB x-buffers + ~2 MiB weights + 1.3 MiB h  -> ~27 MiB
TILE_M_F32 = 1024    # 2 x 11.3 MiB x-buffers + 5.6 MiB cast temp + weights -> ~33 MiB
MIN_TILE_M = 16      # 16 sublanes: satisfies bf16 (16,128) and f32 (8,128) tiling


def _mlp_kernel(x_ref, w1_ref, b1_ref, w2_ref, b2_ref, o_ref):
    x = x_ref[...]
    if x.dtype != jnp.bfloat16:
        # f32-x fallback: cast once per tile (tile capped so the temp stays small).
        x = x.astype(jnp.bfloat16)
    # Layer 1: bf16 MXU matmul, f32 accumulation; bias + ReLU in f32 on the VPU.
    h = jnp.dot(x, w1_ref[...], preferred_element_type=jnp.float32)
    h = jnp.maximum(h + b1_ref[...], 0.0)
    # Layer 2: bf16 MXU matmul, f32 accumulation; bias add in f32.
    y = jnp.dot(h.astype(jnp.bfloat16), w2_ref[...],
                preferred_element_type=jnp.float32)
    o_ref[...] = (y + b2_ref[...]).astype(o_ref.dtype)


@functools.partial(jax.jit, static_argnames=("tile_m",))
def _forward(x, w1, b1, w2, b2, tile_m):
    n = x.shape[0]
    return pl.pallas_call(
        _mlp_kernel,
        out_shape=jax.ShapeDtypeStruct((n, OUT_FEATURES), jnp.float32),
        grid=(pl.cdiv(n, tile_m),),
        in_specs=[
            # x: streamed one batch-tile per grid step (double-buffered by Pallas).
            pl.BlockSpec((tile_m, IN_FEATURES), lambda i: (i, 0)),
            # Weights / biases: constant index_map -> DMA'd once, stay resident.
            pl.BlockSpec((IN_FEATURES, HIDDEN), lambda i: (0, 0)),
            pl.BlockSpec((1, HIDDEN), lambda i: (0, 0)),
            pl.BlockSpec((HIDDEN, OUT_FEATURES), lambda i: (0, 0)),
            pl.BlockSpec((1, OUT_FEATURES), lambda i: (0, 0)),
        ],
        out_specs=pl.BlockSpec((tile_m, OUT_FEATURES), lambda i: (i, 0)),
        compiler_params=pltpu.CompilerParams(
            dimension_semantics=("parallel",),   # shard batch across v7x's 2 TCs
            vmem_limit_bytes=48 << 20,           # <= v7x physical 64 MiB with headroom
        ),
    )(x, w1, b1, w2, b2)


def _pick_tile_m(n, x_dtype):
    """Power-of-two tile bucket, aiming for >=2 grid steps (v7x megacore)."""
    cap = TILE_M_BF16 if x_dtype == jnp.bfloat16 else TILE_M_F32
    half = -(-n // 2)                      # ceil(n / 2)
    t = MIN_TILE_M
    while t < half and t < cap:
        t *= 2
    return min(t, cap)


def neural_net_forward(x, w1, b1, w2, b2):
    """y = relu(x @ W1 + b1) @ W2 + b2 for x of shape (N, 2883), any N.

    Fast path: x already bf16 in HBM (halves the dominant DMA traffic).
    f32 x also works (cast happens in-kernel on the VPU, not in the wrapper).
    """
    tile_m = _pick_tile_m(x.shape[0], x.dtype)
    return _forward(x, w1, b1, w2, b2, tile_m)


def init_params(key):
    """Deterministic init mirroring nn.Linear's uniform(-1/sqrt(fan_in), 1/sqrt(fan_in)).

    Weights stored bf16 (halves HBM traffic, native MXU rate); biases f32.
    """
    k1, k2, k3, k4 = jax.random.split(key, 4)
    bound1 = 1.0 / jnp.sqrt(jnp.float32(IN_FEATURES))
    bound2 = 1.0 / jnp.sqrt(jnp.float32(HIDDEN))
    w1 = jax.random.uniform(k1, (IN_FEATURES, HIDDEN), jnp.float32, -bound1, bound1)
    b1 = jax.random.uniform(k2, (1, HIDDEN), jnp.float32, -bound1, bound1)
    w2 = jax.random.uniform(k3, (HIDDEN, OUT_FEATURES), jnp.float32, -bound2, bound2)
    b2 = jax.random.uniform(k4, (1, OUT_FEATURES), jnp.float32, -bound2, bound2)
    return w1.astype(jnp.bfloat16), b1, w2.astype(jnp.bfloat16), b2


def reference_forward(x, w1, b1, w2, b2):
    """Pure-JAX reference of the same (bf16-input, f32-accumulate) math."""
    xb = x.astype(jnp.bfloat16).astype(jnp.float32)
    h = jnp.maximum(xb @ w1.astype(jnp.float32) + b1, 0.0)
    hb = h.astype(jnp.bfloat16).astype(jnp.float32)
    return hb @ w2.astype(jnp.float32) + b2


if __name__ == "__main__":
    key = jax.random.PRNGKey(0)
    k_x, k_p = jax.random.split(key)
    w1, b1, w2, b2 = init_params(k_p)

    # 1) bf16 fast path, tiny batch (single partial tile).
    N = 2
    x = jax.random.normal(k_x, (N, IN_FEATURES), jnp.float32).astype(jnp.bfloat16)
    y = jax.block_until_ready(neural_net_forward(x, w1, b1, w2, b2))
    assert y.shape == (N, OUT_FEATURES)
    assert jnp.allclose(y, reference_forward(x, w1, b1, w2, b2), atol=1e-2, rtol=1e-2)

    # 2) bf16 fast path, multi-tile: 650 rows -> tile 512 -> 2 grid steps
    #    (exercises ragged last tile + both v7x TensorCores via "parallel").
    N2 = 650
    x2 = jax.random.normal(k_x, (N2, IN_FEATURES), jnp.float32).astype(jnp.bfloat16)
    y2 = jax.block_until_ready(neural_net_forward(x2, w1, b1, w2, b2))
    assert y2.shape == (N2, OUT_FEATURES)
    assert jnp.allclose(y2, reference_forward(x2, w1, b1, w2, b2), atol=1e-2, rtol=1e-2)

    # 3) f32 fallback path (in-kernel cast), small batch.
    N3 = 10
    x3 = jax.random.normal(k_x, (N3, IN_FEATURES), jnp.float32)
    y3 = jax.block_until_ready(neural_net_forward(x3, w1, b1, w2, b2))
    assert y3.shape == (N3, OUT_FEATURES)
    assert jnp.allclose(y3, reference_forward(x3, w1, b1, w2, b2), atol=1e-2, rtol=1e-2)

    print("KERNEL_OK")
</pallas_src>

<mosaic_0001>
module attributes {stable_mosaic.version = 11 : i64} {
  func.func @_mlp_kernel(%arg0: i32, %arg1: memref<16x2883xbf16, #tpu.memory_space<vmem>>, %arg2: memref<2883x160xbf16, #tpu.memory_space<vmem>>, %arg3: memref<1x160xf32, #tpu.memory_space<vmem>>, %arg4: memref<160x5xbf16, #tpu.memory_space<vmem>>, %arg5: memref<1x5xf32, #tpu.memory_space<vmem>>, %arg6: memref<16x5xf32, #tpu.memory_space<vmem>>) attributes {dimension_semantics = [#tpu.dimension_semantics<parallel>], iteration_bounds = array<i64: 1>, scalar_prefetch = 0 : i64, scratch_operands = 0 : i64, tpu.core_type = #tpu.core_type<tc>, window_params = [{transform_indices = @transform_0, window_bounds = array<i64: 16, 2883>}, {pipeline_mode = #tpu.pipeline_mode<synchronous>, transform_indices = @transform_1, window_bounds = array<i64: 2883, 160>}, {pipeline_mode = #tpu.pipeline_mode<synchronous>, transform_indices = @transform_2, window_bounds = array<i64: 1, 160>}, {pipeline_mode = #tpu.pipeline_mode<synchronous>, transform_indices = @transform_3, window_bounds = array<i64: 160, 5>}, {pipeline_mode = #tpu.pipeline_mode<synchronous>, transform_indices = @transform_4, window_bounds = array<i64: 1, 5>}, {transform_indices = @transform_5, window_bounds = array<i64: 16, 5>}]} {
    %c0 = arith.constant 0 : index
    %c0_0 = arith.constant 0 : index
    %0 = vector.load %arg1[%c0, %c0_0] : memref<16x2883xbf16, #tpu.memory_space<vmem>>, vector<16x2883xbf16>
    %c0_1 = arith.constant 0 : index
    %c0_2 = arith.constant 0 : index
    %1 = vector.load %arg2[%c0_1, %c0_2] : memref<2883x160xbf16, #tpu.memory_space<vmem>>, vector<2883x160xbf16>
    %cst = arith.constant dense<0.000000e+00> : vector<16x160xf32>
    %2 = tpu.matmul %0, %1, %cst {dimension_numbers = #tpu.dot_dimension_numbers<[1], [0], [0], [1], [0, 0, 1, 1], [], []>} : vector<16x2883xbf16>, vector<2883x160xbf16>, vector<16x160xf32> -> vector<16x160xf32>
    %c0_3 = arith.constant 0 : index
    %c0_4 = arith.constant 0 : index
    %3 = vector.load %arg3[%c0_3, %c0_4] : memref<1x160xf32, #tpu.memory_space<vmem>>, vector<1x160xf32>
    %4 = vector.broadcast %3 : vector<1x160xf32> to vector<16x160xf32>
    %5 = arith.addf %2, %4 : vector<16x160xf32>
    %cst_5 = arith.constant 0.000000e+00 : f32
    %6 = vector.broadcast %cst_5 : f32 to vector<16x160xf32>
    %7 = arith.maximumf %5, %6 : vector<16x160xf32>
    %8 = arith.truncf %7 : vector<16x160xf32> to vector<16x160xbf16>
    %c0_6 = arith.constant 0 : index
    %c0_7 = arith.constant 0 : index
    %9 = vector.load %arg4[%c0_6, %c0_7] : memref<160x5xbf16, #tpu.memory_space<vmem>>, vector<160x5xbf16>
    %cst_8 = arith.constant dense<0.000000e+00> : vector<16x5xf32>
    %10 = tpu.matmul %8, %9, %cst_8 {dimension_numbers = #tpu.dot_dimension_numbers<[1], [0], [0], [1], [0, 0, 1, 1], [], []>} : vector<16x160xbf16>, vector<160x5xbf16>, vector<16x5xf32> -> vector<16x5xf32>
    %c0_9 = arith.constant 0 : index
    %c0_10 = arith.constant 0 : index
    %11 = vector.load %arg5[%c0_9, %c0_10] : memref<1x5xf32, #tpu.memory_space<vmem>>, vector<1x5xf32>
    %12 = vector.broadcast %11 : vector<1x5xf32> to vector<16x5xf32>
    %13 = arith.addf %10, %12 : vector<16x5xf32>
    %c0_11 = arith.constant 0 : index
    %c0_12 = arith.constant 0 : index
    %14 = vector.load %arg6[%c0_11, %c0_12] : memref<16x5xf32, #tpu.memory_space<vmem>>, vector<16x5xf32>
    tpu.vector_store %arg6[%c0_11, %c0_12], %13 {strides = array<i32>} : memref<16x5xf32, #tpu.memory_space<vmem>>, vector<16x5xf32>,
    return
  }
  func.func @transform_0(%arg0: i32) -> (i32, i32) {
    %c0_i32 = arith.constant 0 : i32
    %c0_i32_0 = arith.constant 0 : i32
    return %arg0, %c0_i32 : i32, i32
  }
  func.func @transform_1(%arg0: i32) -> (i32, i32) {
    %c0_i32 = arith.constant 0 : i32
    %c0_i32_0 = arith.constant 0 : i32
    %c0_i32_1 = arith.constant 0 : i32
    return %c0_i32, %c0_i32_0 : i32, i32
  }
  func.func @transform_2(%arg0: i32) -> (i32, i32) {
    %c0_i32 = arith.constant 0 : i32
    %c0_i32_0 = arith.constant 0 : i32
    %c0_i32_1 = arith.constant 0 : i32
    return %c0_i32, %c0_i32_0 : i32, i32
  }
  func.func @transform_3(%arg0: i32) -> (i32, i32) {
    %c0_i32 = arith.constant 0 : i32
    %c0_i32_0 = arith.constant 0 : i32
    %c0_i32_1 = arith.constant 0 : i32
    return %c0_i32, %c0_i32_0 : i32, i32
  }
  func.func @transform_4(%arg0: i32) -> (i32, i32) {
    %c0_i32 = arith.constant 0 : i32
    %c0_i32_0 = arith.constant 0 : i32
    %c0_i32_1 = arith.constant 0 : i32
    return %c0_i32, %c0_i32_0 : i32, i32
  }
  func.func @transform_5(%arg0: i32) -> (i32, i32) {
    %c0_i32 = arith.constant 0 : i32
    %c0_i32_0 = arith.constant 0 : i32
    return %arg0, %c0_i32 : i32, i32
  }
}

</mosaic_0001>

<bundles_post_ra>
// kernel: _forward.1
= control target key start
LH: loop header
LB: loop body
LE: loop exit
PB: predicated region body
PF: predicated region fallthrough
CT: control target
= control target key end

     0   :  { %10 = vsyncpa [#allocation3], 0  ;;  %v409_v38 = vlaneseq  ;;  %v4355_v39 = vmov 1966171168   ;;  %vm2681_vm0 = vcmask 1040384   ;;  %vm2682_vm1 = vcmask 1041408   ;;  %s5731_s0 = inlined_call_operand.vmem [shape: bf16[2,2883], index: 0, kind: input, shape index: {}]   ;;  %s5732_s1 = inlined_call_operand.vmem [shape: bf16[2883,160], index: 1, kind: input, shape index: {}]   ;;  %s5733_s2 = inlined_call_operand.vmem [shape: f32[1,160], index: 2, kind: input, shape index: {}]   ;;  %s5734_s3 = inlined_call_operand.vmem [shape: bf16[160,5], index: 3, kind: input, shape index: {}]   ;;  %s5735_s4 = inlined_call_operand.vmem [shape: f32[1,5], index: 4, kind: input, shape index: {}]   ;;  %s5736_s5 = inlined_call_operand.hbm [shape: f32[2,5], index: 5, kind: output, shape index: {}]  }
   0x1   :  { %v3745_v0 = vld [vmem:[%s5732_s1 + $0x74] ss:$8 sps:$4 sm:$0xff]   ;;  %v3747_v1 = vld [vmem:[%s5732_s1 + $0x70] ss:$8 sps:$4 sm:$0xff]   ;;  %v3751_v4 = vld [vmem:[%s5732_s1 + $0x64] ss:$8 sps:$4 sm:$0xff]   ;;  %v452_v40 = vunpack.c.l.s4 %v4355_v39 }
   0x2   :  { %v3748_v2 = vld [vmem:[%s5732_s1 + $0x174] ss:$8 sps:$4 sm:$0xff]   ;;  %v3750_v3 = vld [vmem:[%s5732_s1 + $0x170] ss:$8 sps:$4 sm:$0xff]   ;;  %2691 = vmatprep.subr.bf16.mxu0 %v3745_v0  ;;  %v3753_v5 = vld [vmem:[%s5732_s1 + $0x60] ss:$8 sps:$4 sm:$0xff]  }
   0x3   :  { %2692 = vmatpush1.bf16.msra.mxu0 %v3747_v1  ;;  %2734 = vmatprep.subr.bf16.mxu1 %v3748_v2  ;;  %v3754_v6 = vld [vmem:[%s5732_s1 + $0x164] ss:$8 sps:$4 sm:$0xff]   ;;  %v3756_v7 = vld [vmem:[%s5732_s1 + $0x160] ss:$8 sps:$4 sm:$0xff]   ;;  %v3757_v8 = vld [vmem:[%s5732_s1 + $0x54] ss:$8 sps:$4 sm:$0xff]   ;;  %v453_v46 = vunpack.c.0.s8 %v452_v40 }
   0x4   :  { %2735 = vmatpush1.bf16.msra.mxu1 %v3750_v3  ;;  %2693 = vmatprep.subr.bf16.mxu0 %v3751_v4  ;;  %v3760_v9 = vld [vmem:[%s5732_s1 + $0x154] ss:$8 sps:$4 sm:$0xff]   ;;  %v3759_v10 = vld [vmem:[%s5732_s1 + $0x50] ss:$8 sps:$4 sm:$0xff]   ;;  %v3763_v12 = vld [vmem:[%s5732_s1 + $0x44] ss:$8 sps:$4 sm:$0xff]  }
   0x5   :  { %2736 = vmatprep.subr.bf16.mxu1 %v3754_v6  ;;  %v3762_v11 = vld [vmem:[%s5732_s1 + $0x150] ss:$8 sps:$4 sm:$0xff]   ;;  %v3766_v13 = vld [vmem:[%s5732_s1 + $0x144] ss:$8 sps:$4 sm:$0xff]   ;;  %v3765_v14 = vld [vmem:[%s5732_s1 + $0x40] ss:$8 sps:$4 sm:$0xff]  }
   0x6   :  { %v3768_v15 = vld [vmem:[%s5732_s1 + $0x140] ss:$8 sps:$4 sm:$0xff]   ;;  %v3769_v16 = vld [vmem:[%s5732_s1 + $0x34] ss:$8 sps:$4 sm:$0xff]   ;;  %v3771_v18 = vld [vmem:[%s5732_s1 + $0x30] ss:$8 sps:$4 sm:$0xff]  }
   0x7   :  { %2694 = vmatpush1.bf16.msra.mxu0 %v3753_v5  ;;  %v3772_v17 = vld [vmem:[%s5732_s1 + $0x134] ss:$8 sps:$4 sm:$0xff]   ;;  %v3774_v19 = vld [vmem:[%s5732_s1 + $0x130] ss:$8 sps:$4 sm:$0xff]   ;;  %v3775_v20 = vld [vmem:[%s5732_s1 + $0x24] ss:$8 sps:$4 sm:$0xff]  }
   0x8   :  { %2737 = vmatpush1.bf16.msra.mxu1 %v3756_v7  ;;  %2695 = vmatprep.subr.bf16.mxu0 %v3757_v8  ;;  %v3778_v21 = vld [vmem:[%s5732_s1 + $0x124] ss:$8 sps:$4 sm:$0xff]   ;;  %v3777_v22 = vld [vmem:[%s5732_s1 + $0x20] ss:$8 sps:$4 sm:$0xff]   ;;  %v3781_v24 = vld [vmem:[%s5732_s1 + $0x14] ss:$8 sps:$4 sm:$0xff]  }
   0x9   :  { %2738 = vmatprep.subr.bf16.mxu1 %v3760_v9  ;;  %v3780_v23 = vld [vmem:[%s5732_s1 + $0x120] ss:$8 sps:$4 sm:$0xff]   ;;  %v3784_v25 = vld [vmem:[%s5732_s1 + $0x114] ss:$8 sps:$4 sm:$0xff]   ;;  %v3783_v26 = vld [vmem:[%s5732_s1 + $0x10] ss:$8 sps:$4 sm:$0xff]  }
   0xa   :  { %v3786_v27 = vld [vmem:[%s5732_s1 + $0x110] ss:$8 sps:$4 sm:$0xff]   ;;  %v3787_v28 = vld [vmem:[%s5732_s1 + $0x4] ss:$8 sps:$4 sm:$0xff]   ;;  %v3789_v30 = vld [vmem:[%s5732_s1] ss:$8 sps:$4 sm:$0xff]  }
   0xb   :  { %2696 = vmatpush1.bf16.msra.mxu0 %v3759_v10  ;;  %v3790_v29 = vld [vmem:[%s5732_s1 + $0x104] ss:$8 sps:$4 sm:$0xff]   ;;  %v3792_v31 = vld [vmem:[%s5732_s1 + $0x100] ss:$8 sps:$4 sm:$0xff]   ;;  %v3793_v32 = vld [vmem:[%s5732_s1 + $0xf4] ss:$8 sps:$4 sm:$0xff]  }
   0xc   :  { %2739 = vmatpush1.bf16.msra.mxu1 %v3762_v11  ;;  %2697 = vmatprep.subr.bf16.mxu0 %v3763_v12  ;;  %v3796_v33 = vld [vmem:[%s5732_s1 + $0x1f4] ss:$8 sps:$4 sm:$0xff]   ;;  %v3795_v34 = vld [vmem:[%s5732_s1 + $0xf0] ss:$8 sps:$4 sm:$0xff]   ;;  %v3799_v36 = vld [vmem:[%s5732_s1 + $0xe4] ss:$8 sps:$4 sm:$0xff]  }
   0xd   :  { %2740 = vmatprep.subr.bf16.mxu1 %v3766_v13  ;;  %v3798_v35 = vld [vmem:[%s5732_s1 + $0x1f0] ss:$8 sps:$4 sm:$0xff]   ;;  %v3802_v37 = vld [vmem:[%s5732_s1 + $0x1e4] ss:$8 sps:$4 sm:$0xff]   ;;  %v3801_v41 = vld [vmem:[%s5732_s1 + $0xe0] ss:$8 sps:$4 sm:$0xff]  }
   0xe   :  { %v3804_v42 = vld [vmem:[%s5732_s1 + $0x1e0] ss:$8 sps:$4 sm:$0xff]   ;;  %v3805_v43 = vld [vmem:[%s5732_s1 + $0xd4] ss:$8 sps:$4 sm:$0xff]   ;;  %v4517_v45 = vshrl.u32 %v409_v38, 7  ;;  %vm2677_vm2 = vcmask 547840  }
   0xf   :  { %2698 = vmatpush1.bf16.msra.mxu0 %v3765_v14  ;;  %v3808_v44 = vld [vmem:[%s5732_s1 + $0x1d4] ss:$8 sps:$4 sm:$0xff]   ;;  %v3807_v47 = vld [vmem:[%s5732_s1 + $0xd0] ss:$8 sps:$4 sm:$0xff]   ;;  %v3811_v49 = vld [vmem:[%s5732_s1 + $0xc4] ss:$8 sps:$4 sm:$0xff]  }
  0x10   :  { %2741 = vmatpush1.bf16.msra.mxu1 %v3768_v15  ;;  %2699 = vmatprep.subr.bf16.mxu0 %v3769_v16  ;;  %v3810_v48 = vld [vmem:[%s5732_s1 + $0x1d0] ss:$8 sps:$4 sm:$0xff]   ;;  %v3813_v50 = vld [vmem:[%s5732_s1 + $0xc0] ss:$8 sps:$4 sm:$0xff]   ;;  %v3814_v51 = vld [vmem:[%s5732_s1 + $0x1c4] ss:$8 sps:$4 sm:$0xff]   ;;  %v4538_v53 = vsub.s32 %v453_v46, %v4517_v45 }
  0x11   :  { %2742 = vmatprep.subr.bf16.mxu1 %v3772_v17  ;;  %v3816_v52 = vld [vmem:[%s5732_s1 + $0x1c0] ss:$8 sps:$4 sm:$0xff]   ;;  %v3817_v54 = vld [vmem:[%s5732_s1 + $0xb4] ss:$8 sps:$4 sm:$0xff]   ;;  %v3819_v56 = vld [vmem:[%s5732_s1 + $0xb0] ss:$8 sps:$4 sm:$0xff]  }
  0x12   :  { %v3840_v55 = vld [vmem:[%s5731_s0] ss:$23 sps:$4 sm:$0xff]   ;;  %v3843_v58 = vld [vmem:[%s5731_s0 + $0x2e] ss:$23 sps:$4 sm:$0xff]   ;;  %v3846_v59 = vld [vmem:[%s5731_s0 + $0x5c] ss:$23 sps:$4 sm:$0xff]  }
  0x13   :  { %2700 = vmatpush1.bf16.msra.mxu0 %v3771_v18  ;;  %v3820_v57 = vld [vmem:[%s5732_s1 + $0x1b4] ss:$8 sps:$4 sm:$0xff]   ;;  %v3822_v60 = vld [vmem:[%s5732_s1 + $0x1b0] ss:$8 sps:$4 sm:$0xff]   ;;  %v3823_v61 = vld [vmem:[%s5732_s1 + $0xa4] ss:$8 sps:$4 sm:$0xff]   ;;  %v457_v63 = vrot.slane %v3840_v55, %v4538_v53  ;;  %v471_v1 = vrot.slane %v3843_v58, %v4538_v53  ;;  %v485_v2 = vrot.slane %v3846_v59, %v4538_v53 }
  0x14   :  { %2743 = vmatpush1.bf16.msra.mxu1 %v3774_v19  ;;  %2701 = vmatprep.subr.bf16.mxu0 %v3775_v20  ;;  %v3849_v62 = vld [vmem:[%s5731_s0 + $0x8a] ss:$23 sps:$4 sm:$0xff]   ;;  %v3851_v7 = vld [vmem:[%s5731_s0 + $0x8e] ss:$23 sps:$4 sm:$0xff]   ;;  %v3829_v13 = vld [vmem:[%s5732_s1 + $0x94] ss:$8 sps:$4 sm:$0xff]  }
  0x15   :  { %2744 = vmatprep.subr.bf16.mxu1 %v3778_v21  ;;  %v3826_v0 = vld [vmem:[%s5732_s1 + $0x1a4] ss:$8 sps:$4 sm:$0xff]   ;;  %v499_v5 = vrot.slane %v3849_v62, %v4538_v53  ;;  %v3848_v6 = vld [vmem:[%s5731_s0 + $0x60] ss:$23 sps:$4 sm:$0xff]   ;;  %v508_v8 = vcombine.high %v457_v63, %v471_v1  ;;  %v4610_v19 = vrot.slane %v3851_v7, %v4538_v53  ;;  %v507_v21 = vcombine.low %v457_v63, %v471_v1 }
  0x16   :  { %v3842_v3 = vld [vmem:[%s5731_s0 + $0x4] ss:$23 sps:$4 sm:$0xff]   ;;  %v3845_v4 = vld [vmem:[%s5731_s0 + $0x32] ss:$23 sps:$4 sm:$0xff]   ;;  %v4607_v18 = vrot.slane %v3848_v6, %v4538_v53  ;;  %vm3300_vm3 = vcmask 261120   ;;  %vm3345_vm4 = vcmask 39936  }
  0x17   :  { %2702 = vmatpush1.bf16.msra.mxu0 %v3777_v22  ;;  %v512_v9 = vcombine.high %v485_v2, %v499_v5  ;;  %v3825_v10 = vld [vmem:[%s5732_s1 + $0xa0] ss:$8 sps:$4 sm:$0xff]   ;;  %v535_v11 = vrot.slane %v508_v8, %v4538_v53  ;;  %v3832_v15 = vld [vmem:[%s5732_s1 + $0x194] ss:$8 sps:$4 sm:$0xff]   ;;  %v4601_v16 = vrot.slane %v3842_v3, %v4538_v53  ;;  %v4604_v17 = vrot.slane %v3845_v4, %v4538_v53  ;;  %v3853_v39 = vld [vmem:[%s5732_s1 + $0x270] ss:$8 sps:$4 sm:$0xff]  }
  0x18   :  { %2745 = vmatpush1.bf16.msra.mxu1 %v3780_v23  ;;  %2703 = vmatprep.subr.bf16.mxu0 %v3781_v24  ;;  %v3828_v12 = vld [vmem:[%s5732_s1 + $0x1a0] ss:$8 sps:$4 sm:$0xff]   ;;  %v511_v22 = vcombine.low %v485_v2, %v499_v5  ;;  %v3831_v24 = vld [vmem:[%s5732_s1 + $0x90] ss:$8 sps:$4 sm:$0xff]   ;;  %v3876_v55 = vld [vmem:[%s5732_s1 + $0x344] ss:$8 sps:$4 sm:$0xff]  }
  0x19   :  { %2746 = vmatprep.subr.bf16.mxu1 %v3784_v25  ;;  %v563_v14 = vrot.slane %v512_v9, %v4538_v53  ;;  %v3834_v25 = vld [vmem:[%s5732_s1 + $0x190] ss:$8 sps:$4 sm:$0xff]   ;;  %v3879_v58 = vld [vmem:[%s5732_s1 + $0x234] ss:$8 sps:$4 sm:$0xff]   ;;  %v3885_v62 = vld [vmem:[%s5732_s1 + $0x224] ss:$8 sps:$4 sm:$0xff]  }
  0x1a   :  { %v3882_v59 = vld [vmem:[%s5732_s1 + $0x334] ss:$8 sps:$4 sm:$0xff]   ;;  %v3888_v63 = vld [vmem:[%s5732_s1 + $0x324] ss:$8 sps:$4 sm:$0xff]   ;;  %v3886_v1 = vld [vmem:[%s5732_s1 + $0x320] ss:$8 sps:$4 sm:$0xff]  }
  0x1b   :  { %2704 = vmatpush1.bf16.msra.mxu0 %v3783_v26  ;;  %v575_v20 = vcombine.low %v535_v11, %v563_v14  ;;  %v576_v23 = vcombine.high %v535_v11, %v563_v14  ;;  %v3835_v26 = vld [vmem:[%s5732_s1 + $0x84] ss:$8 sps:$4 sm:$0xff]   ;;  %v3891_v2 = vld [vmem:[%s5732_s1 + $0x214] ss:$8 sps:$4 sm:$0xff]   ;;  %v3889_v4 = vld [vmem:[%s5732_s1 + $0x210] ss:$8 sps:$4 sm:$0xff]  }
  0x1c   :  { %2747 = vmatpush1.bf16.msra.mxu1 %v3786_v27  ;;  %2705 = vmatprep.subr.bf16.mxu0 %v3787_v28  ;;  %v3838_v27 = vld [vmem:[%s5732_s1 + $0x184] ss:$8 sps:$4 sm:$0xff]   ;;  %v510_v28 = vcombine.high %v4601_v16, %v4604_v17  ;;  %v3894_v3 = vld [vmem:[%s5732_s1 + $0x314] ss:$8 sps:$4 sm:$0xff]   ;;  %v3892_v5 = vld [vmem:[%s5732_s1 + $0x310] ss:$8 sps:$4 sm:$0xff]  }
  0x1d   :  { %2748 = vmatprep.subr.bf16.mxu1 %v3790_v29  ;;  %2723 = vmatprep.mubr.bf16.mxu0 %v575_v20  ;;  %v514_v29 = vcombine.high %v4607_v18, %v4610_v19  ;;  %v3897_v6 = vld [vmem:[%s5732_s1 + $0x204] ss:$8 sps:$4 sm:$0xff]   ;;  %v3895_v8 = vld [vmem:[%s5732_s1 + $0x200] ss:$8 sps:$4 sm:$0xff]   ;;  %v3906_v11 = vld [vmem:[%s5732_s1 + $0x3f4] ss:$8 sps:$4 sm:$0xff]  }
  0x1e   :  { %2766 = vmatprep.mubr.bf16.mxu1 %v576_v23  ;;  %v3900_v7 = vld [vmem:[%s5732_s1 + $0x304] ss:$8 sps:$4 sm:$0xff]   ;;  %v3898_v9 = vld [vmem:[%s5732_s1 + $0x300] ss:$8 sps:$4 sm:$0xff]   ;;  %v3918_v23 = vld [vmem:[%s5732_s1 + $0x3d4] ss:$8 sps:$4 sm:$0xff]  }
  0x1f   :  { %2706 = vmatpush1.bf16.msra.mxu0 %v3789_v30  ;;  %v521_v30 = vrot.slane %v507_v21, %v4538_v53  ;;  %v3909_v14 = vld [vmem:[%s5732_s1 + $0x2e4] ss:$8 sps:$4 sm:$0xff]   ;;  %v3907_v20 = vld [vmem:[%s5732_s1 + $0x2e0] ss:$8 sps:$4 sm:$0xff]  }
  0x20   :  { %2749 = vmatpush1.bf16.msra.mxu1 %v3792_v31  ;;  %2707 = vmatprep.subr.bf16.mxu0 %v3793_v32  ;;  %v549_v31 = vrot.slane %v511_v22, %v4538_v53  ;;  %v3837_v32 = vld [vmem:[%s5732_s1 + $0x80] ss:$8 sps:$4 sm:$0xff]   ;;  %v3915_v22 = vld [vmem:[%s5732_s1 + $0x2d4] ss:$8 sps:$4 sm:$0xff]  }
  0x21   :  { %2750 = vmatprep.subr.bf16.mxu1 %v3796_v33  ;;  %v3852_v33 = vld [vmem:[%s5732_s1 + $0x180] ss:$8 sps:$4 sm:$0xff]  }
  0x22   :  { %v571_v38 = vcombine.low %v521_v30, %v549_v31  ;;  %v572_v40 = vcombine.high %v521_v30, %v549_v31  ;;  %v3910_v21 = vld [vmem:[%s5732_s1 + $0x3e0] ss:$8 sps:$4 sm:$0xff]   ;;  %v3927_v30 = vld [vmem:[%s5732_s1 + $0x2b4] ss:$8 sps:$4 sm:$0xff]  }
  0x23   :  { %2708 = vmatpush2.bf16.msra.mxu0 %v3795_v34  ;;  %v3855_v34 = vld [vmem:[%s5732_s1 + $0x274] ss:$8 sps:$4 sm:$0xff]  }
  0x24   :  { %2751 = vmatpush2.bf16.msra.mxu1 %v3798_v35  ;;  %2709 = vmatprep.subr.bf16.mxu0 %v3799_v36  ;;  %v3858_v35 = vld [vmem:[%s5732_s1 + $0x374] ss:$8 sps:$4 sm:$0xff]   ;;  %v542_v36 = vrot.slane %v510_v28, %v4538_v53  ;;  %v3919_v28 = vld [vmem:[%s5732_s1 + $0x2c0] ss:$8 sps:$4 sm:$0xff]  }
  0x25   :  { %2752 = vmatprep.subr.bf16.mxu1 %v3802_v37  ;;  %v570_v37 = vrot.slane %v514_v29, %v4538_v53  ;;  %v3922_v29 = vld [vmem:[%s5732_s1 + $0x3c0] ss:$8 sps:$4 sm:$0xff]   ;;  %v3930_v31 = vld [vmem:[%s5732_s1 + $0x3b4] ss:$8 sps:$4 sm:$0xff]  }
  0x27   :  { %2710 = vmatpush2.bf16.msra.mxu0 %v3801_v41  ;;  %v3856_v41 = vld [vmem:[%s5732_s1 + $0x370] ss:$8 sps:$4 sm:$0xff]   ;;  %v578_v46 = vcombine.high %v542_v36, %v570_v37 }
  0x28   :  { %2753 = vmatpush2.bf16.msra.mxu1 %v3804_v42  ;;  %2711 = vmatprep.subr.bf16.mxu0 %v3805_v43  ;;  %v3861_v42 = vld [vmem:[%s5732_s1 + $0x264] ss:$8 sps:$4 sm:$0xff]  }
  0x29   :  { %2754 = vmatprep.subr.bf16.mxu1 %v3808_v44  ;;  %v3864_v43 = vld [vmem:[%s5732_s1 + $0x364] ss:$8 sps:$4 sm:$0xff]   ;;  %v577_v44 = vcombine.low %v542_v36, %v570_v37  ;;  %v3931_v36 = vld [vmem:[%s5732_s1 + $0x2a0] ss:$8 sps:$4 sm:$0xff]  }
  0x2a   :  { %v3934_v37 = vld [vmem:[%s5732_s1 + $0x3a0] ss:$8 sps:$4 sm:$0xff]  }
  0x2b   :  { %2712 = vmatpush2.bf16.msra.mxu0 %v3807_v47  ;;  %v3859_v47 = vld [vmem:[%s5732_s1 + $0x260] ss:$8 sps:$4 sm:$0xff]  }
  0x2c   :  { %2755 = vmatpush2.bf16.msra.mxu1 %v3810_v48  ;;  %2713 = vmatprep.subr.bf16.mxu0 %v3811_v49  ;;  %v3862_v48 = vld [vmem:[%s5732_s1 + $0x360] ss:$8 sps:$4 sm:$0xff]   ;;  %v3867_v49 = vld [vmem:[%s5732_s1 + $0x254] ss:$8 sps:$4 sm:$0xff]  }
  0x2d   :  { %2756 = vmatprep.subr.bf16.mxu1 %v3814_v51  ;;  %v3865_v51 = vld [vmem:[%s5732_s1 + $0x250] ss:$8 sps:$4 sm:$0xff]  }
  0x2f   :  { %2714 = vmatpush2.bf16.msra.mxu0 %v3813_v50  ;;  %v3870_v50 = vld [vmem:[%s5732_s1 + $0x354] ss:$8 sps:$4 sm:$0xff]  }
  0x30   :  { %2757 = vmatpush2.bf16.msra.mxu1 %v3816_v52  ;;  %2715 = vmatprep.subr.bf16.mxu0 %v3817_v54  ;;  %v3868_v52 = vld [vmem:[%s5732_s1 + $0x350] ss:$8 sps:$4 sm:$0xff]   ;;  %v3873_v54 = vld [vmem:[%s5732_s1 + $0x244] ss:$8 sps:$4 sm:$0xff]  }
  0x31   :  { %2758 = vmatprep.subr.bf16.mxu1 %v3820_v57  ;;  %v3874_v57 = vld [vmem:[%s5732_s1 + $0x340] ss:$8 sps:$4 sm:$0xff]  }
  0x33   :  { %2716 = vmatpush2.bf16.msra.mxu0 %v3819_v56  ;;  %v3871_v56 = vld [vmem:[%s5732_s1 + $0x240] ss:$8 sps:$4 sm:$0xff]  }
  0x34   :  { %2759 = vmatpush2.bf16.msra.mxu1 %v3822_v60  ;;  %2717 = vmatprep.subr.bf16.mxu0 %v3823_v61  ;;  %v3877_v60 = vld [vmem:[%s5732_s1 + $0x230] ss:$8 sps:$4 sm:$0xff]  }
  0x35   :  { %2760 = vmatprep.subr.bf16.mxu1 %v3826_v0  ;;  %v3880_v61 = vld [vmem:[%s5732_s1 + $0x330] ss:$8 sps:$4 sm:$0xff]   ;;  %v3883_v0 = vld [vmem:[%s5732_s1 + $0x220] ss:$8 sps:$4 sm:$0xff]  }
  0x37   :  { %2718 = vmatpush2.bf16.msra.mxu0 %v3825_v10  ;;  %v3903_v10 = vld [vmem:[%s5732_s1 + $0x2f4] ss:$8 sps:$4 sm:$0xff]  }
  0x38   :  { %2761 = vmatpush2.bf16.msra.mxu1 %v3828_v12  ;;  %2719 = vmatprep.subr.bf16.mxu0 %v3829_v13  ;;  %v3901_v12 = vld [vmem:[%s5732_s1 + $0x2f0] ss:$8 sps:$4 sm:$0xff]  }
  0x39   :  { %2762 = vmatprep.subr.bf16.mxu1 %v3832_v15  ;;  %v3904_v13 = vld [vmem:[%s5732_s1 + $0x3f0] ss:$8 sps:$4 sm:$0xff]   ;;  %v3912_v15 = vld [vmem:[%s5732_s1 + $0x3e4] ss:$8 sps:$4 sm:$0xff]  }
  0x3b   :  { %2720 = vmatpush2.bf16.msra.mxu0 %v3831_v24  ;;  %v3913_v24 = vld [vmem:[%s5732_s1 + $0x2d0] ss:$8 sps:$4 sm:$0xff]  }
  0x3c   :  { %2763 = vmatpush2.bf16.msra.mxu1 %v3834_v25  ;;  %2721 = vmatprep.subr.bf16.mxu0 %v3835_v26  ;;  %v3916_v25 = vld [vmem:[%s5732_s1 + $0x3d0] ss:$8 sps:$4 sm:$0xff]   ;;  %v3921_v26 = vld [vmem:[%s5732_s1 + $0x2c4] ss:$8 sps:$4 sm:$0xff]  }
  0x3d   :  { %2764 = vmatprep.subr.bf16.mxu1 %v3838_v27  ;;  %v3924_v27 = vld [vmem:[%s5732_s1 + $0x3c4] ss:$8 sps:$4 sm:$0xff]  }
  0x3f   :  { %2722 = vmatpush2.bf16.msra.mxu0 %v3837_v32  ;;  %v3925_v32 = vld [vmem:[%s5732_s1 + $0x2b0] ss:$8 sps:$4 sm:$0xff]  }
  0x40   :  { %2765 = vmatpush2.bf16.msra.mxu1 %v3852_v33  ;;  %2777 = vmatprep.subr.bf16.mxu0 %v3855_v34  ;;  %v3928_v33 = vld [vmem:[%s5732_s1 + $0x3b0] ss:$8 sps:$4 sm:$0xff]   ;;  %v3933_v34 = vld [vmem:[%s5732_s1 + $0x2a4] ss:$8 sps:$4 sm:$0xff]  }
  0x41   :  { %2820 = vmatprep.subr.bf16.mxu1 %v3858_v35  ;;  %v3936_v35 = vld [vmem:[%s5732_s1 + $0x3a4] ss:$8 sps:$4 sm:$0xff]  }
  0x42   :  { %2724 = vmatmul.mubr.bf16.vlgmr.msra.gmra.mxu0 %v571_v38  ;;  %v3939_v38 = vld [vmem:[%s5732_s1 + $0x294] ss:$8 sps:$4 sm:$0xff]  }
  0x43   :  { %2778 = vmatpush1.bf16.msra.mxu0 %v3853_v39  ;;  %2767 = vmatmul.mubr.bf16.vlgmr.msra.gmra.mxu1 %v572_v40  ;;  %v3942_v39 = vld [vmem:[%s5732_s1 + $0x394] ss:$8 sps:$4 sm:$0xff]   ;;  %v509_v40 = vcombine.low %v4601_v16, %v4604_v17  ;;  %v3948_v16 = vld [vmem:[%s5732_s1 + $0x384] ss:$8 sps:$4 sm:$0xff]  }
  0x44   :  { %2821 = vmatpush1.bf16.msra.mxu1 %v3856_v41  ;;  %2779 = vmatprep.subr.bf16.mxu0 %v3861_v42  ;;  %v513_v41 = vcombine.low %v4607_v18, %v4610_v19  ;;  %v3937_v42 = vld [vmem:[%s5732_s1 + $0x290] ss:$8 sps:$4 sm:$0xff]   ;;  %v3943_v19 = vld [vmem:[%s5732_s1 + $0x280] ss:$8 sps:$4 sm:$0xff]  }
  0x45   :  { %2822 = vmatprep.subr.bf16.mxu1 %v3864_v43  ;;  %2809 = vmatprep.mubr.bf16.mxu0 %v577_v44  ;;  %v3940_v43 = vld [vmem:[%s5732_s1 + $0x390] ss:$8 sps:$4 sm:$0xff]   ;;  %v3945_v44 = vld [vmem:[%s5732_s1 + $0x284] ss:$8 sps:$4 sm:$0xff]   ;;  %v528_v17 = vrot.slane %v509_v40, %v4538_v53 }
  0x46   :  { %2852 = vmatprep.mubr.bf16.mxu1 %v578_v46  ;;  %v556_v18 = vrot.slane %v513_v41, %v4538_v53  ;;  %v3946_v46 = vld [vmem:[%s5732_s1 + $0x380] ss:$8 sps:$4 sm:$0xff]   ;;  %v4005_v40 = vld [vmem:[%s5732_s1 + $0x4e4] ss:$8 sps:$4 sm:$0xff]  }
  0x47   :  { %2780 = vmatpush1.bf16.msra.mxu0 %v3859_v47  ;;  %v3951_v47 = vld [vmem:[%s5732_s1 + $0x474] ss:$8 sps:$4 sm:$0xff]   ;;  %v4008_v41 = vld [vmem:[%s5732_s1 + $0x5e4] ss:$8 sps:$4 sm:$0xff]  }
  0x48   :  { %2823 = vmatpush1.bf16.msra.mxu1 %v3862_v48  ;;  %2781 = vmatprep.subr.bf16.mxu0 %v3867_v49  ;;  %v3954_v48 = vld [vmem:[%s5732_s1 + $0x574] ss:$8 sps:$4 sm:$0xff]   ;;  %v573_v49 = vcombine.low %v528_v17, %v556_v18 }
  0x49   :  { %2824 = vmatprep.subr.bf16.mxu1 %v3870_v50  ;;  %v3949_v50 = vld [vmem:[%s5732_s1 + $0x470] ss:$8 sps:$4 sm:$0xff]  }
  0x4b   :  { %2782 = vmatpush1.bf16.msra.mxu0 %v3865_v51  ;;  %v574_v51 = vcombine.high %v528_v17, %v556_v18  ;;  %v4009_v17 = vld [vmem:[%s5732_s1 + $0x4d0] ss:$8 sps:$4 sm:$0xff]  }
  0x4c   :  { %2825 = vmatpush1.bf16.msra.mxu1 %v3868_v52  ;;  %2783 = vmatprep.subr.bf16.mxu0 %v3873_v54  ;;  %v3952_v52 = vld [vmem:[%s5732_s1 + $0x570] ss:$8 sps:$4 sm:$0xff]   ;;  %v3957_v54 = vld [vmem:[%s5732_s1 + $0x464] ss:$8 sps:$4 sm:$0xff]  }
  0x4d   :  { %2826 = vmatprep.subr.bf16.mxu1 %v3876_v55  ;;  %v3960_v55 = vld [vmem:[%s5732_s1 + $0x564] ss:$8 sps:$4 sm:$0xff]   ;;  %v4012_v18 = vld [vmem:[%s5732_s1 + $0x5d0] ss:$8 sps:$4 sm:$0xff]  }
  0x4f   :  { %2784 = vmatpush1.bf16.msra.mxu0 %v3871_v56  ;;  %v3955_v56 = vld [vmem:[%s5732_s1 + $0x460] ss:$8 sps:$4 sm:$0xff]  }
  0x50   :  { %2827 = vmatpush1.bf16.msra.mxu1 %v3874_v57  ;;  %2785 = vmatprep.subr.bf16.mxu0 %v3879_v58  ;;  %v3958_v57 = vld [vmem:[%s5732_s1 + $0x560] ss:$8 sps:$4 sm:$0xff]   ;;  %v3963_v58 = vld [vmem:[%s5732_s1 + $0x454] ss:$8 sps:$4 sm:$0xff]  }
  0x51   :  { %2828 = vmatprep.subr.bf16.mxu1 %v3882_v59  ;;  %v3966_v59 = vld [vmem:[%s5732_s1 + $0x554] ss:$8 sps:$4 sm:$0xff]  }
  0x53   :  { %2786 = vmatpush1.bf16.msra.mxu0 %v3877_v60  ;;  %v3961_v60 = vld [vmem:[%s5732_s1 + $0x450] ss:$8 sps:$4 sm:$0xff]  }
  0x54   :  { %2829 = vmatpush1.bf16.msra.mxu1 %v3880_v61  ;;  %2787 = vmatprep.subr.bf16.mxu0 %v3885_v62  ;;  %v3964_v61 = vld [vmem:[%s5732_s1 + $0x550] ss:$8 sps:$4 sm:$0xff]   ;;  %v3969_v62 = vld [vmem:[%s5732_s1 + $0x444] ss:$8 sps:$4 sm:$0xff]  }
  0x55   :  { %2830 = vmatprep.subr.bf16.mxu1 %v3888_v63  ;;  %v4045_v63 = vld [vmem:[%s5731_s0 + $0x8] ss:$23 sps:$4 sm:$0xff]  }
  0x57   :  { %2788 = vmatpush1.bf16.msra.mxu0 %v3883_v0  ;;  %v4047_v0 = vld [vmem:[%s5731_s0 + $0x36] ss:$23 sps:$4 sm:$0xff]  }
  0x58   :  { %2831 = vmatpush1.bf16.msra.mxu1 %v3886_v1  ;;  %2789 = vmatprep.subr.bf16.mxu0 %v3891_v2  ;;  %v4049_v1 = vld [vmem:[%s5731_s0 + $0x64] ss:$23 sps:$4 sm:$0xff]   ;;  %v4051_v2 = vld [vmem:[%s5731_s0 + $0x92] ss:$23 sps:$4 sm:$0xff]  }
  0x59   :  { %2832 = vmatprep.subr.bf16.mxu1 %v3894_v3  ;;  %v3972_v3 = vld [vmem:[%s5732_s1 + $0x544] ss:$8 sps:$4 sm:$0xff]  }
  0x5b   :  { %2790 = vmatpush1.bf16.msra.mxu0 %v3889_v4  ;;  %v4891_v4 = vrot.slane %v4045_v63, %v4538_v53  ;;  %v4038_v63 = vld [vmem:[%s5732_s1 + $0x594] ss:$8 sps:$4 sm:$0xff]  }
  0x5c   :  { %2833 = vmatpush1.bf16.msra.mxu1 %v3892_v5  ;;  %2791 = vmatprep.subr.bf16.mxu0 %v3897_v6  ;;  %v4894_v5 = vrot.slane %v4047_v0, %v4538_v53  ;;  %v4897_v6 = vrot.slane %v4049_v1, %v4538_v53 }
  0x5d   :  { %2834 = vmatprep.subr.bf16.mxu1 %v3900_v7  ;;  %v4900_v7 = vrot.slane %v4051_v2, %v4538_v53 }
  0x5e   :  { %v643_v2 = vcombine.low %v4891_v4, %v4894_v5 }
  0x5f   :  { %2792 = vmatpush1.bf16.msra.mxu0 %v3895_v8  ;;  %v3967_v8 = vld [vmem:[%s5732_s1 + $0x440] ss:$8 sps:$4 sm:$0xff]  }
  0x60   :  { %2835 = vmatpush1.bf16.msra.mxu1 %v3898_v9  ;;  %2793 = vmatprep.subr.bf16.mxu0 %v3903_v10  ;;  %v644_v9 = vcombine.high %v4891_v4, %v4894_v5  ;;  %v3970_v10 = vld [vmem:[%s5732_s1 + $0x540] ss:$8 sps:$4 sm:$0xff]   ;;  %v4036_v4 = vld [vmem:[%s5732_s1 + $0x590] ss:$8 sps:$4 sm:$0xff]   ;;  %v4041_v5 = vld [vmem:[%s5732_s1 + $0x484] ss:$8 sps:$4 sm:$0xff]  }
  0x61   :  { %2836 = vmatprep.subr.bf16.mxu1 %v3906_v11  ;;  %v3975_v11 = vld [vmem:[%s5732_s1 + $0x434] ss:$8 sps:$4 sm:$0xff]  }
  0x63   :  { %2794 = vmatpush2.bf16.msra.mxu0 %v3901_v12  ;;  %v648_v12 = vcombine.high %v4897_v6, %v4900_v7 }
  0x64   :  { %2837 = vmatpush2.bf16.msra.mxu1 %v3904_v13  ;;  %2795 = vmatprep.subr.bf16.mxu0 %v3909_v14  ;;  %v3978_v13 = vld [vmem:[%s5732_s1 + $0x534] ss:$8 sps:$4 sm:$0xff]   ;;  %v671_v14 = vrot.slane %v644_v9, %v4538_v53 }
  0x65   :  { %2838 = vmatprep.subr.bf16.mxu1 %v3912_v15  ;;  %v699_v15 = vrot.slane %v648_v12, %v4538_v53  ;;  %v657_v12 = vrot.slane %v643_v2, %v4538_v53  ;;  %v4115_v2 = vld [vmem:[%s5732_s1 + $0x6d4] ss:$8 sps:$4 sm:$0xff]  }
  0x67   :  { %2796 = vmatpush2.bf16.msra.mxu0 %v3907_v20  ;;  %v3973_v20 = vld [vmem:[%s5732_s1 + $0x430] ss:$8 sps:$4 sm:$0xff]  }
  0x68   :  { %2839 = vmatpush2.bf16.msra.mxu1 %v3910_v21  ;;  %2797 = vmatprep.subr.bf16.mxu0 %v3915_v22  ;;  %v3976_v21 = vld [vmem:[%s5732_s1 + $0x530] ss:$8 sps:$4 sm:$0xff]   ;;  %v3981_v22 = vld [vmem:[%s5732_s1 + $0x424] ss:$8 sps:$4 sm:$0xff]  }
  0x69   :  { %2840 = vmatprep.subr.bf16.mxu1 %v3918_v23  ;;  %v711_v23 = vcombine.low %v671_v14, %v699_v15 }
  0x6b   :  { %2798 = vmatpush2.bf16.msra.mxu0 %v3913_v24  ;;  %v712_v24 = vcombine.high %v671_v14, %v699_v15  ;;  %v4039_v14 = vld [vmem:[%s5732_s1 + $0x480] ss:$8 sps:$4 sm:$0xff]  }
  0x6c   :  { %2841 = vmatpush2.bf16.msra.mxu1 %v3916_v25  ;;  %2799 = vmatprep.subr.bf16.mxu0 %v3921_v26  ;;  %v3984_v25 = vld [vmem:[%s5732_s1 + $0x524] ss:$8 sps:$4 sm:$0xff]   ;;  %v3979_v26 = vld [vmem:[%s5732_s1 + $0x420] ss:$8 sps:$4 sm:$0xff]  }
  0x6d   :  { %2842 = vmatprep.subr.bf16.mxu1 %v3924_v27  ;;  %v3982_v27 = vld [vmem:[%s5732_s1 + $0x520] ss:$8 sps:$4 sm:$0xff]  }
  0x6e   :  { %v4042_v15 = vld [vmem:[%s5732_s1 + $0x580] ss:$8 sps:$4 sm:$0xff]  }
  0x6f   :  { %2800 = vmatpush2.bf16.msra.mxu0 %v3919_v28  ;;  %v3987_v28 = vld [vmem:[%s5732_s1 + $0x414] ss:$8 sps:$4 sm:$0xff]  }
  0x70   :  { %2843 = vmatpush2.bf16.msra.mxu1 %v3922_v29  ;;  %2801 = vmatprep.subr.bf16.mxu0 %v3927_v30  ;;  %v3990_v29 = vld [vmem:[%s5732_s1 + $0x514] ss:$8 sps:$4 sm:$0xff]   ;;  %v3985_v30 = vld [vmem:[%s5732_s1 + $0x410] ss:$8 sps:$4 sm:$0xff]  }
  0x71   :  { %2844 = vmatprep.subr.bf16.mxu1 %v3930_v31  ;;  %v3988_v31 = vld [vmem:[%s5732_s1 + $0x510] ss:$8 sps:$4 sm:$0xff]  }
  0x73   :  { %2802 = vmatpush2.bf16.msra.mxu0 %v3925_v32  ;;  %v3993_v32 = vld [vmem:[%s5732_s1 + $0x404] ss:$8 sps:$4 sm:$0xff]  }
  0x74   :  { %2845 = vmatpush2.bf16.msra.mxu1 %v3928_v33  ;;  %2803 = vmatprep.subr.bf16.mxu0 %v3933_v34  ;;  %v3996_v33 = vld [vmem:[%s5732_s1 + $0x504] ss:$8 sps:$4 sm:$0xff]   ;;  %v3991_v34 = vld [vmem:[%s5732_s1 + $0x400] ss:$8 sps:$4 sm:$0xff]  }
  0x75   :  { %2846 = vmatprep.subr.bf16.mxu1 %v3936_v35  ;;  %v3994_v35 = vld [vmem:[%s5732_s1 + $0x500] ss:$8 sps:$4 sm:$0xff]  }
  0x77   :  { %2804 = vmatpush2.bf16.msra.mxu0 %v3931_v36  ;;  %v3999_v36 = vld [vmem:[%s5732_s1 + $0x4f4] ss:$8 sps:$4 sm:$0xff]  }
  0x78   :  { %2847 = vmatpush2.bf16.msra.mxu1 %v3934_v37  ;;  %2805 = vmatprep.subr.bf16.mxu0 %v3939_v38  ;;  %v4002_v37 = vld [vmem:[%s5732_s1 + $0x5f4] ss:$8 sps:$4 sm:$0xff]   ;;  %v3997_v38 = vld [vmem:[%s5732_s1 + $0x4f0] ss:$8 sps:$4 sm:$0xff]  }
  0x79   :  { %2848 = vmatprep.subr.bf16.mxu1 %v3942_v39  ;;  %v4000_v39 = vld [vmem:[%s5732_s1 + $0x5f0] ss:$8 sps:$4 sm:$0xff]  }
  0x7b   :  { %2806 = vmatpush2.bf16.msra.mxu0 %v3937_v42  ;;  %v4003_v42 = vld [vmem:[%s5732_s1 + $0x4e0] ss:$8 sps:$4 sm:$0xff]  }
  0x7c   :  { %2849 = vmatpush2.bf16.msra.mxu1 %v3940_v43  ;;  %2807 = vmatprep.subr.bf16.mxu0 %v3945_v44  ;;  %v4006_v43 = vld [vmem:[%s5732_s1 + $0x5e0] ss:$8 sps:$4 sm:$0xff]   ;;  %v4011_v44 = vld [vmem:[%s5732_s1 + $0x4d4] ss:$8 sps:$4 sm:$0xff]  }
  0x7d   :  { %2850 = vmatprep.subr.bf16.mxu1 %v3948_v16  ;;  %v4014_v16 = vld [vmem:[%s5732_s1 + $0x5d4] ss:$8 sps:$4 sm:$0xff]  }
  0x7f   :  { %2808 = vmatpush2.bf16.msra.mxu0 %v3943_v19  ;;  %v4017_v19 = vld [vmem:[%s5732_s1 + $0x4c4] ss:$8 sps:$4 sm:$0xff]  }
  0x80   :  { %2851 = vmatpush2.bf16.msra.mxu1 %v3946_v46  ;;  %2863 = vmatprep.subr.bf16.mxu0 %v3951_v47  ;;  %v4020_v46 = vld [vmem:[%s5732_s1 + $0x5c4] ss:$8 sps:$4 sm:$0xff]   ;;  %v4015_v47 = vld [vmem:[%s5732_s1 + $0x4c0] ss:$8 sps:$4 sm:$0xff]  }
  0x81   :  { %2906 = vmatprep.subr.bf16.mxu1 %v3954_v48  ;;  %v4018_v48 = vld [vmem:[%s5732_s1 + $0x5c0] ss:$8 sps:$4 sm:$0xff]  }
  0x82   :  { %2810 = vmatmul.mubr.bf16.vlgmr.msra.gmra.mxu0 %v573_v49  ;;  %v4023_v49 = vld [vmem:[%s5732_s1 + $0x4b4] ss:$8 sps:$4 sm:$0xff]  }
  0x83   :  { %2864 = vmatpush1.bf16.msra.mxu0 %v3949_v50  ;;  %2853 = vmatmul.mubr.bf16.vlgmr.msra.gmra.mxu1 %v574_v51  ;;  %v4026_v50 = vld [vmem:[%s5732_s1 + $0x5b4] ss:$8 sps:$4 sm:$0xff]   ;;  %v4021_v51 = vld [vmem:[%s5732_s1 + $0x4b0] ss:$8 sps:$4 sm:$0xff]  }
  0x84   :  { %2907 = vmatpush1.bf16.msra.mxu1 %v3952_v52  ;;  %2865 = vmatprep.subr.bf16.mxu0 %v3957_v54  ;;  %v4024_v52 = vld [vmem:[%s5732_s1 + $0x5b0] ss:$8 sps:$4 sm:$0xff]   ;;  %v4029_v54 = vld [vmem:[%s5732_s1 + $0x4a4] ss:$8 sps:$4 sm:$0xff]  }
  0x85   :  { %2908 = vmatprep.subr.bf16.mxu1 %v3960_v55  ;;  %2895 = vmatprep.mubr.bf16.mxu0 %v711_v23  ;;  %v4032_v55 = vld [vmem:[%s5732_s1 + $0x5a4] ss:$8 sps:$4 sm:$0xff]  }
  0x86   :  { %2938 = vmatprep.mubr.bf16.mxu1 %v712_v24 }
  0x87   :  { %2866 = vmatpush1.bf16.msra.mxu0 %v3955_v56  ;;  %v4027_v56 = vld [vmem:[%s5732_s1 + $0x4a0] ss:$8 sps:$4 sm:$0xff]  }
  0x88   :  { %2909 = vmatpush1.bf16.msra.mxu1 %v3958_v57  ;;  %2867 = vmatprep.subr.bf16.mxu0 %v3963_v58  ;;  %v4030_v57 = vld [vmem:[%s5732_s1 + $0x5a0] ss:$8 sps:$4 sm:$0xff]  }
  0x89   :  { %2910 = vmatprep.subr.bf16.mxu1 %v3966_v59  ;;  %v4149_v58 = vld [vmem:[%s5731_s0 + $0xc] ss:$23 sps:$4 sm:$0xff]   ;;  %v4150_v59 = vld [vmem:[%s5731_s0 + $0x3a] ss:$23 sps:$4 sm:$0xff]  }
  0x8a   :  { %v5053_v0 = vrot.slane %v4149_v58, %v4538_v53  ;;  %v5056_v1 = vrot.slane %v4150_v59, %v4538_v53  ;;  %v4106_v58 = vld [vmem:[%s5732_s1 + $0x7f4] ss:$8 sps:$4 sm:$0xff]   ;;  %v4104_v59 = vld [vmem:[%s5732_s1 + $0x7f0] ss:$8 sps:$4 sm:$0xff]  }
  0x8b   :  { %2868 = vmatpush1.bf16.msra.mxu0 %v3961_v60  ;;  %v4035_v60 = vld [vmem:[%s5732_s1 + $0x494] ss:$8 sps:$4 sm:$0xff]  }
  0x8c   :  { %2911 = vmatpush1.bf16.msra.mxu1 %v3964_v61  ;;  %2869 = vmatprep.subr.bf16.mxu0 %v3969_v62  ;;  %v4151_v61 = vld [vmem:[%s5731_s0 + $0x68] ss:$23 sps:$4 sm:$0xff]   ;;  %v4152_v62 = vld [vmem:[%s5731_s0 + $0x96] ss:$23 sps:$4 sm:$0xff]  }
  0x8d   :  { %2912 = vmatprep.subr.bf16.mxu1 %v3972_v3  ;;  %v647_v3 = vcombine.low %v4897_v6, %v4900_v7  ;;  %v5066_v9 = vrot.slane %v4152_v62, %v4538_v53  ;;  %v4044_v6 = vld [vmem:[%s5732_s1 + $0x584] ss:$8 sps:$4 sm:$0xff]   ;;  %v646_v7 = vcombine.high %v5053_v0, %v5056_v1  ;;  %v4107_v62 = vld [vmem:[%s5732_s1 + $0x6e0] ss:$8 sps:$4 sm:$0xff]  }
  0x8f   :  { %2870 = vmatpush1.bf16.msra.mxu0 %v3967_v8  ;;  %v5063_v8 = vrot.slane %v4151_v61, %v4538_v53  ;;  %v4112_v61 = vld [vmem:[%s5732_s1 + $0x7e4] ss:$8 sps:$4 sm:$0xff]  }
  0x90   :  { %2913 = vmatpush1.bf16.msra.mxu1 %v3970_v10  ;;  %2871 = vmatprep.subr.bf16.mxu0 %v3975_v11  ;;  %v4033_v10 = vld [vmem:[%s5732_s1 + $0x490] ss:$8 sps:$4 sm:$0xff]  }
  0x91   :  { %2914 = vmatprep.subr.bf16.mxu1 %v3978_v13  ;;  %v650_v11 = vcombine.high %v5063_v8, %v5066_v9  ;;  %v685_v13 = vrot.slane %v647_v3, %v4538_v53  ;;  %v4118_v3 = vld [vmem:[%s5732_s1 + $0x7d4] ss:$8 sps:$4 sm:$0xff]  }
  0x93   :  { %2872 = vmatpush1.bf16.msra.mxu0 %v3973_v20  ;;  %v4055_v20 = vld [vmem:[%s5732_s1 + $0x674] ss:$8 sps:$4 sm:$0xff]   ;;  %v706_v23 = vrot.slane %v650_v11, %v4538_v53  ;;  %v707_v24 = vcombine.low %v657_v12, %v685_v13  ;;  %v4122_v11 = vld [vmem:[%s5732_s1 + $0x7c0] ss:$8 sps:$4 sm:$0xff]  }
  0x94   :  { %2915 = vmatpush1.bf16.msra.mxu1 %v3976_v21  ;;  %2873 = vmatprep.subr.bf16.mxu0 %v3981_v22  ;;  %v4058_v21 = vld [vmem:[%s5732_s1 + $0x774] ss:$8 sps:$4 sm:$0xff]   ;;  %v678_v22 = vrot.slane %v646_v7, %v4538_v53  ;;  %v4119_v7 = vld [vmem:[%s5732_s1 + $0x6c0] ss:$8 sps:$4 sm:$0xff]  }
  0x95   :  { %2916 = vmatprep.subr.bf16.mxu1 %v3984_v25  ;;  %v4053_v25 = vld [vmem:[%s5732_s1 + $0x670] ss:$8 sps:$4 sm:$0xff]  }
  0x97   :  { %2874 = vmatpush1.bf16.msra.mxu0 %v3979_v26  ;;  %v708_v26 = vcombine.high %v657_v12, %v685_v13  ;;  %v4127_v12 = vld [vmem:[%s5732_s1 + $0x6b4] ss:$8 sps:$4 sm:$0xff]   ;;  %v4125_v13 = vld [vmem:[%s5732_s1 + $0x6b0] ss:$8 sps:$4 sm:$0xff]  }
  0x98   :  { %2917 = vmatpush1.bf16.msra.mxu1 %v3982_v27  ;;  %2875 = vmatprep.subr.bf16.mxu0 %v3987_v28  ;;  %v4056_v27 = vld [vmem:[%s5732_s1 + $0x770] ss:$8 sps:$4 sm:$0xff]   ;;  %v4061_v28 = vld [vmem:[%s5732_s1 + $0x664] ss:$8 sps:$4 sm:$0xff]  }
  0x99   :  { %2918 = vmatprep.subr.bf16.mxu1 %v3990_v29  ;;  %v4064_v29 = vld [vmem:[%s5732_s1 + $0x764] ss:$8 sps:$4 sm:$0xff]  }
  0x9b   :  { %2876 = vmatpush1.bf16.msra.mxu0 %v3985_v30  ;;  %v713_v30 = vcombine.low %v678_v22, %v706_v23 }
  0x9c   :  { %2919 = vmatpush1.bf16.msra.mxu1 %v3988_v31  ;;  %2877 = vmatprep.subr.bf16.mxu0 %v3993_v32  ;;  %v714_v31 = vcombine.high %v678_v22, %v706_v23  ;;  %v4059_v32 = vld [vmem:[%s5732_s1 + $0x660] ss:$8 sps:$4 sm:$0xff]  }
  0x9d   :  { %2920 = vmatprep.subr.bf16.mxu1 %v3996_v33  ;;  %v4062_v33 = vld [vmem:[%s5732_s1 + $0x760] ss:$8 sps:$4 sm:$0xff]  }
  0x9e   :  { %v4249_v22 = vld [vmem:[%s5731_s0 + $0x10] ss:$23 sps:$4 sm:$0xff]   ;;  %v4252_v23 = vld [vmem:[%s5731_s0 + $0x3e] ss:$23 sps:$4 sm:$0xff]  }
  0x9f   :  { %2878 = vmatpush1.bf16.msra.mxu0 %v3991_v34  ;;  %v4067_v34 = vld [vmem:[%s5732_s1 + $0x654] ss:$8 sps:$4 sm:$0xff]  }
  0xa0   :  { %2921 = vmatpush1.bf16.msra.mxu1 %v3994_v35  ;;  %2879 = vmatprep.subr.bf16.mxu0 %v3999_v36  ;;  %v4070_v35 = vld [vmem:[%s5732_s1 + $0x754] ss:$8 sps:$4 sm:$0xff]   ;;  %v4065_v36 = vld [vmem:[%s5732_s1 + $0x650] ss:$8 sps:$4 sm:$0xff]  }
  0xa1   :  { %2922 = vmatprep.subr.bf16.mxu1 %v4002_v37  ;;  %v4068_v37 = vld [vmem:[%s5732_s1 + $0x750] ss:$8 sps:$4 sm:$0xff]  }
  0xa3   :  { %2880 = vmatpush2.bf16.msra.mxu0 %v3997_v38  ;;  %v4073_v38 = vld [vmem:[%s5732_s1 + $0x644] ss:$8 sps:$4 sm:$0xff]  }
  0xa4   :  { %2923 = vmatpush2.bf16.msra.mxu1 %v4000_v39  ;;  %2881 = vmatprep.subr.bf16.mxu0 %v4005_v40  ;;  %v4076_v39 = vld [vmem:[%s5732_s1 + $0x744] ss:$8 sps:$4 sm:$0xff]   ;;  %v4071_v40 = vld [vmem:[%s5732_s1 + $0x640] ss:$8 sps:$4 sm:$0xff]  }
  0xa5   :  { %2924 = vmatprep.subr.bf16.mxu1 %v4008_v41  ;;  %v4074_v41 = vld [vmem:[%s5732_s1 + $0x740] ss:$8 sps:$4 sm:$0xff]  }
  0xa7   :  { %2882 = vmatpush2.bf16.msra.mxu0 %v4003_v42  ;;  %v4079_v42 = vld [vmem:[%s5732_s1 + $0x634] ss:$8 sps:$4 sm:$0xff]  }
  0xa8   :  { %2925 = vmatpush2.bf16.msra.mxu1 %v4006_v43  ;;  %2883 = vmatprep.subr.bf16.mxu0 %v4011_v44  ;;  %v4082_v43 = vld [vmem:[%s5732_s1 + $0x734] ss:$8 sps:$4 sm:$0xff]   ;;  %v4077_v44 = vld [vmem:[%s5732_s1 + $0x630] ss:$8 sps:$4 sm:$0xff]  }
  0xa9   :  { %2926 = vmatprep.subr.bf16.mxu1 %v4014_v16  ;;  %v4080_v16 = vld [vmem:[%s5732_s1 + $0x730] ss:$8 sps:$4 sm:$0xff]  }
  0xab   :  { %2884 = vmatpush2.bf16.msra.mxu0 %v4009_v17  ;;  %v4085_v17 = vld [vmem:[%s5732_s1 + $0x624] ss:$8 sps:$4 sm:$0xff]  }
  0xac   :  { %2927 = vmatpush2.bf16.msra.mxu1 %v4012_v18  ;;  %2885 = vmatprep.subr.bf16.mxu0 %v4017_v19  ;;  %v4088_v18 = vld [vmem:[%s5732_s1 + $0x724] ss:$8 sps:$4 sm:$0xff]   ;;  %v4083_v19 = vld [vmem:[%s5732_s1 + $0x620] ss:$8 sps:$4 sm:$0xff]  }
  0xad   :  { %2928 = vmatprep.subr.bf16.mxu1 %v4020_v46  ;;  %v4086_v46 = vld [vmem:[%s5732_s1 + $0x720] ss:$8 sps:$4 sm:$0xff]  }
  0xaf   :  { %2886 = vmatpush2.bf16.msra.mxu0 %v4015_v47  ;;  %v4091_v47 = vld [vmem:[%s5732_s1 + $0x614] ss:$8 sps:$4 sm:$0xff]  }
  0xb0   :  { %2929 = vmatpush2.bf16.msra.mxu1 %v4018_v48  ;;  %2887 = vmatprep.subr.bf16.mxu0 %v4023_v49  ;;  %v4094_v48 = vld [vmem:[%s5732_s1 + $0x714] ss:$8 sps:$4 sm:$0xff]   ;;  %v4089_v49 = vld [vmem:[%s5732_s1 + $0x610] ss:$8 sps:$4 sm:$0xff]  }
  0xb1   :  { %2930 = vmatprep.subr.bf16.mxu1 %v4026_v50  ;;  %v4092_v50 = vld [vmem:[%s5732_s1 + $0x710] ss:$8 sps:$4 sm:$0xff]  }
  0xb3   :  { %2888 = vmatpush2.bf16.msra.mxu0 %v4021_v51  ;;  %v4097_v51 = vld [vmem:[%s5732_s1 + $0x604] ss:$8 sps:$4 sm:$0xff]  }
  0xb4   :  { %2931 = vmatpush2.bf16.msra.mxu1 %v4024_v52  ;;  %2889 = vmatprep.subr.bf16.mxu0 %v4029_v54  ;;  %v4100_v52 = vld [vmem:[%s5732_s1 + $0x704] ss:$8 sps:$4 sm:$0xff]   ;;  %v4095_v54 = vld [vmem:[%s5732_s1 + $0x600] ss:$8 sps:$4 sm:$0xff]  }
  0xb5   :  { %2932 = vmatprep.subr.bf16.mxu1 %v4032_v55  ;;  %v4098_v55 = vld [vmem:[%s5732_s1 + $0x700] ss:$8 sps:$4 sm:$0xff]  }
  0xb7   :  { %2890 = vmatpush2.bf16.msra.mxu0 %v4027_v56  ;;  %v4103_v56 = vld [vmem:[%s5732_s1 + $0x6f4] ss:$8 sps:$4 sm:$0xff]  }
  0xb8   :  { %2933 = vmatpush2.bf16.msra.mxu1 %v4030_v57  ;;  %2891 = vmatprep.subr.bf16.mxu0 %v4035_v60  ;;  %v4101_v57 = vld [vmem:[%s5732_s1 + $0x6f0] ss:$8 sps:$4 sm:$0xff]   ;;  %v4109_v60 = vld [vmem:[%s5732_s1 + $0x6e4] ss:$8 sps:$4 sm:$0xff]  }
  0xb9   :  { %2934 = vmatprep.subr.bf16.mxu1 %v4038_v63  ;;  %v4110_v63 = vld [vmem:[%s5732_s1 + $0x7e0] ss:$8 sps:$4 sm:$0xff]  }
  0xbb   :  { %2892 = vmatpush2.bf16.msra.mxu0 %v4033_v10  ;;  %v4113_v10 = vld [vmem:[%s5732_s1 + $0x6d0] ss:$8 sps:$4 sm:$0xff]  }
  0xbc   :  { %2935 = vmatpush2.bf16.msra.mxu1 %v4036_v4  ;;  %2893 = vmatprep.subr.bf16.mxu0 %v4041_v5  ;;  %v4116_v4 = vld [vmem:[%s5732_s1 + $0x7d0] ss:$8 sps:$4 sm:$0xff]   ;;  %v4121_v5 = vld [vmem:[%s5732_s1 + $0x6c4] ss:$8 sps:$4 sm:$0xff]  }
  0xbd   :  { %2936 = vmatprep.subr.bf16.mxu1 %v4044_v6  ;;  %v4124_v6 = vld [vmem:[%s5732_s1 + $0x7c4] ss:$8 sps:$4 sm:$0xff]  }
  0xbf   :  { %2894 = vmatpush2.bf16.msra.mxu0 %v4039_v14  ;;  %v4130_v14 = vld [vmem:[%s5732_s1 + $0x7b4] ss:$8 sps:$4 sm:$0xff]  }
  0xc0   :  { %2937 = vmatpush2.bf16.msra.mxu1 %v4042_v15  ;;  %2949 = vmatprep.subr.bf16.mxu0 %v4055_v20  ;;  %v4128_v15 = vld [vmem:[%s5732_s1 + $0x7b0] ss:$8 sps:$4 sm:$0xff]   ;;  %v4133_v20 = vld [vmem:[%s5732_s1 + $0x6a4] ss:$8 sps:$4 sm:$0xff]  }
  0xc1   :  { %2992 = vmatprep.subr.bf16.mxu1 %v4058_v21  ;;  %v4136_v21 = vld [vmem:[%s5732_s1 + $0x7a4] ss:$8 sps:$4 sm:$0xff]  }
  0xc2   :  { %2896 = vmatmul.mubr.bf16.vlgmr.msra.gmra.mxu0 %v707_v24  ;;  %v4255_v24 = vld [vmem:[%s5731_s0 + $0x6c] ss:$23 sps:$4 sm:$0xff]  }
  0xc3   :  { %2950 = vmatpush1.bf16.msra.mxu0 %v4053_v25  ;;  %2939 = vmatmul.mubr.bf16.vlgmr.msra.gmra.mxu1 %v708_v26  ;;  %v4258_v25 = vld [vmem:[%s5731_s0 + $0x9a] ss:$23 sps:$4 sm:$0xff]   ;;  %v4131_v26 = vld [vmem:[%s5732_s1 + $0x6a0] ss:$8 sps:$4 sm:$0xff]  }
  0xc4   :  { %2993 = vmatpush1.bf16.msra.mxu1 %v4056_v27  ;;  %2951 = vmatprep.subr.bf16.mxu0 %v4061_v28  ;;  %v4134_v27 = vld [vmem:[%s5732_s1 + $0x7a0] ss:$8 sps:$4 sm:$0xff]   ;;  %v4139_v28 = vld [vmem:[%s5732_s1 + $0x694] ss:$8 sps:$4 sm:$0xff]  }
  0xc5   :  { %2994 = vmatprep.subr.bf16.mxu1 %v4064_v29  ;;  %2981 = vmatprep.mubr.bf16.mxu0 %v713_v30  ;;  %v4142_v29 = vld [vmem:[%s5732_s1 + $0x794] ss:$8 sps:$4 sm:$0xff]   ;;  %v5281_v30 = vrot.slane %v4249_v22, %v4538_v53 }
  0xc6   :  { %3024 = vmatprep.mubr.bf16.mxu1 %v714_v31  ;;  %v5284_v31 = vrot.slane %v4252_v23, %v4538_v53  ;;  %v4203_v22 = vld [vmem:[%s5732_s1 + $0x8f4] ss:$8 sps:$4 sm:$0xff]  }
  0xc7   :  { %2952 = vmatpush1.bf16.msra.mxu0 %v4059_v32  ;;  %v5287_v32 = vrot.slane %v4255_v24, %v4538_v53  ;;  %v4206_v23 = vld [vmem:[%s5732_s1 + $0x9f4] ss:$8 sps:$4 sm:$0xff]   ;;  %v4201_v24 = vld [vmem:[%s5732_s1 + $0x8f0] ss:$8 sps:$4 sm:$0xff]  }
  0xc8   :  { %2995 = vmatpush1.bf16.msra.mxu1 %v4062_v33  ;;  %2953 = vmatprep.subr.bf16.mxu0 %v4067_v34  ;;  %v5290_v33 = vrot.slane %v4258_v25, %v4538_v53  ;;  %v4137_v34 = vld [vmem:[%s5732_s1 + $0x690] ss:$8 sps:$4 sm:$0xff]  }
  0xc9   :  { %2996 = vmatprep.subr.bf16.mxu1 %v4070_v35  ;;  %v645_v35 = vcombine.low %v5053_v0, %v5056_v1  ;;  %v780_v0 = vcombine.high %v5281_v30, %v5284_v31  ;;  %v4204_v25 = vld [vmem:[%s5732_s1 + $0x9f0] ss:$8 sps:$4 sm:$0xff]  }
  0xca   :  { %v784_v1 = vcombine.high %v5287_v32, %v5290_v33 }
  0xcb   :  { %2954 = vmatpush1.bf16.msra.mxu0 %v4065_v36  ;;  %v649_v36 = vcombine.low %v5063_v8, %v5066_v9  ;;  %v4143_v8 = vld [vmem:[%s5732_s1 + $0x680] ss:$8 sps:$4 sm:$0xff]   ;;  %v664_v9 = vrot.slane %v645_v35, %v4538_v53  ;;  %v4218_v35 = vld [vmem:[%s5732_s1 + $0x9d4] ss:$8 sps:$4 sm:$0xff]  }
  0xcc   :  { %2997 = vmatpush1.bf16.msra.mxu1 %v4068_v37  ;;  %2955 = vmatprep.subr.bf16.mxu0 %v4073_v38  ;;  %v4140_v37 = vld [vmem:[%s5732_s1 + $0x790] ss:$8 sps:$4 sm:$0xff]   ;;  %v4145_v38 = vld [vmem:[%s5732_s1 + $0x684] ss:$8 sps:$4 sm:$0xff]  }
  0xcd   :  { %2998 = vmatprep.subr.bf16.mxu1 %v4076_v39  ;;  %v4148_v39 = vld [vmem:[%s5732_s1 + $0x784] ss:$8 sps:$4 sm:$0xff]  }
  0xcf   :  { %2956 = vmatpush1.bf16.msra.mxu0 %v4071_v40  ;;  %v692_v40 = vrot.slane %v649_v36, %v4538_v53  ;;  %v4213_v36 = vld [vmem:[%s5732_s1 + $0x8d0] ss:$8 sps:$4 sm:$0xff]  }
  0xd0   :  { %2999 = vmatpush1.bf16.msra.mxu1 %v4074_v41  ;;  %2957 = vmatprep.subr.bf16.mxu0 %v4079_v42  ;;  %v4146_v41 = vld [vmem:[%s5732_s1 + $0x780] ss:$8 sps:$4 sm:$0xff]   ;;  %v4155_v42 = vld [vmem:[%s5732_s1 + $0x874] ss:$8 sps:$4 sm:$0xff]  }
  0xd1   :  { %3000 = vmatprep.subr.bf16.mxu1 %v4082_v43  ;;  %v4158_v43 = vld [vmem:[%s5732_s1 + $0x974] ss:$8 sps:$4 sm:$0xff]  }
  0xd3   :  { %2958 = vmatpush1.bf16.msra.mxu0 %v4077_v44  ;;  %v807_v44 = vrot.slane %v780_v0, %v4538_v53  ;;  %v4219_v0 = vld [vmem:[%s5732_s1 + $0x8c0] ss:$8 sps:$4 sm:$0xff]  }
  0xd4   :  { %3001 = vmatpush1.bf16.msra.mxu1 %v4080_v16  ;;  %2959 = vmatprep.subr.bf16.mxu0 %v4085_v17  ;;  %v835_v16 = vrot.slane %v784_v1, %v4538_v53  ;;  %v709_v17 = vcombine.low %v664_v9, %v692_v40  ;;  %v4222_v1 = vld [vmem:[%s5732_s1 + $0x9c0] ss:$8 sps:$4 sm:$0xff]  }
  0xd5   :  { %3002 = vmatprep.subr.bf16.mxu1 %v4088_v18  ;;  %v4153_v18 = vld [vmem:[%s5732_s1 + $0x870] ss:$8 sps:$4 sm:$0xff]  }
  0xd7   :  { %2960 = vmatpush1.bf16.msra.mxu0 %v4083_v19  ;;  %v4156_v19 = vld [vmem:[%s5732_s1 + $0x970] ss:$8 sps:$4 sm:$0xff]  }
  0xd8   :  { %3003 = vmatpush1.bf16.msra.mxu1 %v4086_v46  ;;  %2961 = vmatprep.subr.bf16.mxu0 %v4091_v47  ;;  %v710_v46 = vcombine.high %v664_v9, %v692_v40  ;;  %v4161_v47 = vld [vmem:[%s5732_s1 + $0x864] ss:$8 sps:$4 sm:$0xff]   ;;  %v4230_v9 = vld [vmem:[%s5732_s1 + $0x9b4] ss:$8 sps:$4 sm:$0xff]   ;;  %v4225_v40 = vld [vmem:[%s5732_s1 + $0x8b0] ss:$8 sps:$4 sm:$0xff]  }
  0xd9   :  { %3004 = vmatprep.subr.bf16.mxu1 %v4094_v48  ;;  %v4164_v48 = vld [vmem:[%s5732_s1 + $0x964] ss:$8 sps:$4 sm:$0xff]  }
  0xdb   :  { %2962 = vmatpush1.bf16.msra.mxu0 %v4089_v49  ;;  %v4159_v49 = vld [vmem:[%s5732_s1 + $0x860] ss:$8 sps:$4 sm:$0xff]  }
  0xdc   :  { %3005 = vmatpush1.bf16.msra.mxu1 %v4092_v50  ;;  %2963 = vmatprep.subr.bf16.mxu0 %v4097_v51  ;;  %v847_v50 = vcombine.low %v807_v44, %v835_v16  ;;  %v4162_v51 = vld [vmem:[%s5732_s1 + $0x960] ss:$8 sps:$4 sm:$0xff]  }
  0xdd   :  { %3006 = vmatprep.subr.bf16.mxu1 %v4100_v52  ;;  %v4167_v52 = vld [vmem:[%s5732_s1 + $0x854] ss:$8 sps:$4 sm:$0xff]  }
  0xdf   :  { %2964 = vmatpush1.bf16.msra.mxu0 %v4095_v54  ;;  %v848_v54 = vcombine.high %v807_v44, %v835_v16  ;;  %v4236_v44 = vld [vmem:[%s5732_s1 + $0x9a4] ss:$8 sps:$4 sm:$0xff]   ;;  %v4234_v16 = vld [vmem:[%s5732_s1 + $0x9a0] ss:$8 sps:$4 sm:$0xff]  }
  0xe0   :  { %3007 = vmatpush1.bf16.msra.mxu1 %v4098_v55  ;;  %2965 = vmatprep.subr.bf16.mxu0 %v4103_v56  ;;  %v4170_v55 = vld [vmem:[%s5732_s1 + $0x954] ss:$8 sps:$4 sm:$0xff]   ;;  %v4165_v56 = vld [vmem:[%s5732_s1 + $0x850] ss:$8 sps:$4 sm:$0xff]  }
  0xe1   :  { %3008 = vmatprep.subr.bf16.mxu1 %v4106_v58  ;;  %v4173_v58 = vld [vmem:[%s5732_s1 + $0x844] ss:$8 sps:$4 sm:$0xff]  }
  0xe3   :  { %2966 = vmatpush2.bf16.msra.mxu0 %v4101_v57  ;;  %v4168_v57 = vld [vmem:[%s5732_s1 + $0x950] ss:$8 sps:$4 sm:$0xff]  }
  0xe4   :  { %3009 = vmatpush2.bf16.msra.mxu1 %v4104_v59  ;;  %2967 = vmatprep.subr.bf16.mxu0 %v4109_v60  ;;  %v4176_v59 = vld [vmem:[%s5732_s1 + $0x944] ss:$8 sps:$4 sm:$0xff]   ;;  %v4171_v60 = vld [vmem:[%s5732_s1 + $0x840] ss:$8 sps:$4 sm:$0xff]  }
  0xe5   :  { %3010 = vmatprep.subr.bf16.mxu1 %v4112_v61  ;;  %v4174_v61 = vld [vmem:[%s5732_s1 + $0x940] ss:$8 sps:$4 sm:$0xff]  }
  0xe7   :  { %2968 = vmatpush2.bf16.msra.mxu0 %v4107_v62  ;;  %v4179_v62 = vld [vmem:[%s5732_s1 + $0x834] ss:$8 sps:$4 sm:$0xff]  }
  0xe8   :  { %3011 = vmatpush2.bf16.msra.mxu1 %v4110_v63  ;;  %2969 = vmatprep.subr.bf16.mxu0 %v4115_v2  ;;  %v4182_v63 = vld [vmem:[%s5732_s1 + $0x934] ss:$8 sps:$4 sm:$0xff]   ;;  %v4177_v2 = vld [vmem:[%s5732_s1 + $0x830] ss:$8 sps:$4 sm:$0xff]  }
  0xe9   :  { %3012 = vmatprep.subr.bf16.mxu1 %v4118_v3  ;;  %v4180_v3 = vld [vmem:[%s5732_s1 + $0x930] ss:$8 sps:$4 sm:$0xff]  }
  0xeb   :  { %2970 = vmatpush2.bf16.msra.mxu0 %v4113_v10  ;;  %v4185_v10 = vld [vmem:[%s5732_s1 + $0x824] ss:$8 sps:$4 sm:$0xff]  }
  0xec   :  { %3013 = vmatpush2.bf16.msra.mxu1 %v4116_v4  ;;  %2971 = vmatprep.subr.bf16.mxu0 %v4121_v5  ;;  %v4188_v4 = vld [vmem:[%s5732_s1 + $0x924] ss:$8 sps:$4 sm:$0xff]   ;;  %v4183_v5 = vld [vmem:[%s5732_s1 + $0x820] ss:$8 sps:$4 sm:$0xff]  }
  0xed   :  { %3014 = vmatprep.subr.bf16.mxu1 %v4124_v6  ;;  %v4186_v6 = vld [vmem:[%s5732_s1 + $0x920] ss:$8 sps:$4 sm:$0xff]  }
  0xef   :  { %2972 = vmatpush2.bf16.msra.mxu0 %v4119_v7  ;;  %v4191_v7 = vld [vmem:[%s5732_s1 + $0x814] ss:$8 sps:$4 sm:$0xff]  }
  0xf0   :  { %3015 = vmatpush2.bf16.msra.mxu1 %v4122_v11  ;;  %2973 = vmatprep.subr.bf16.mxu0 %v4127_v12  ;;  %v4194_v11 = vld [vmem:[%s5732_s1 + $0x914] ss:$8 sps:$4 sm:$0xff]   ;;  %v4189_v12 = vld [vmem:[%s5732_s1 + $0x810] ss:$8 sps:$4 sm:$0xff]  }
  0xf1   :  { %3016 = vmatprep.subr.bf16.mxu1 %v4130_v14  ;;  %v4197_v14 = vld [vmem:[%s5732_s1 + $0x804] ss:$8 sps:$4 sm:$0xff]  }
  0xf3   :  { %2974 = vmatpush2.bf16.msra.mxu0 %v4125_v13  ;;  %v4192_v13 = vld [vmem:[%s5732_s1 + $0x910] ss:$8 sps:$4 sm:$0xff]  }
  0xf4   :  { %3017 = vmatpush2.bf16.msra.mxu1 %v4128_v15  ;;  %2975 = vmatprep.subr.bf16.mxu0 %v4133_v20  ;;  %v4200_v15 = vld [vmem:[%s5732_s1 + $0x904] ss:$8 sps:$4 sm:$0xff]   ;;  %v4195_v20 = vld [vmem:[%s5732_s1 + $0x800] ss:$8 sps:$4 sm:$0xff]  }
  0xf5   :  { %3018 = vmatprep.subr.bf16.mxu1 %v4136_v21  ;;  %v4198_v21 = vld [vmem:[%s5732_s1 + $0x900] ss:$8 sps:$4 sm:$0xff]  }
  0xf7   :  { %2976 = vmatpush2.bf16.msra.mxu0 %v4131_v26  ;;  %v4209_v26 = vld [vmem:[%s5732_s1 + $0x8e4] ss:$8 sps:$4 sm:$0xff]  }
  0xf8   :  { %3019 = vmatpush2.bf16.msra.mxu1 %v4134_v27  ;;  %2977 = vmatprep.subr.bf16.mxu0 %v4139_v28  ;;  %v4212_v27 = vld [vmem:[%s5732_s1 + $0x9e4] ss:$8 sps:$4 sm:$0xff]   ;;  %v4207_v28 = vld [vmem:[%s5732_s1 + $0x8e0] ss:$8 sps:$4 sm:$0xff]  }
  0xf9   :  { %3020 = vmatprep.subr.bf16.mxu1 %v4142_v29  ;;  %v4210_v29 = vld [vmem:[%s5732_s1 + $0x9e0] ss:$8 sps:$4 sm:$0xff]  }
  0xfb   :  { %2978 = vmatpush2.bf16.msra.mxu0 %v4137_v34  ;;  %v4215_v34 = vld [vmem:[%s5732_s1 + $0x8d4] ss:$8 sps:$4 sm:$0xff]  }
  0xfc   :  { %3021 = vmatpush2.bf16.msra.mxu1 %v4140_v37  ;;  %2979 = vmatprep.subr.bf16.mxu0 %v4145_v38  ;;  %v4216_v37 = vld [vmem:[%s5732_s1 + $0x9d0] ss:$8 sps:$4 sm:$0xff]   ;;  %v4221_v38 = vld [vmem:[%s5732_s1 + $0x8c4] ss:$8 sps:$4 sm:$0xff]  }
  0xfd   :  { %3022 = vmatprep.subr.bf16.mxu1 %v4148_v39  ;;  %v4224_v39 = vld [vmem:[%s5732_s1 + $0x9c4] ss:$8 sps:$4 sm:$0xff]  }
  0xff   :  { %2980 = vmatpush2.bf16.msra.mxu0 %v4143_v8  ;;  %v4227_v8 = vld [vmem:[%s5732_s1 + $0x8b4] ss:$8 sps:$4 sm:$0xff]  }
 0x100   :  { %3023 = vmatpush2.bf16.msra.mxu1 %v4146_v41  ;;  %3035 = vmatprep.subr.bf16.mxu0 %v4155_v42  ;;  %v4228_v41 = vld [vmem:[%s5732_s1 + $0x9b0] ss:$8 sps:$4 sm:$0xff]   ;;  %v4233_v42 = vld [vmem:[%s5732_s1 + $0x8a4] ss:$8 sps:$4 sm:$0xff]  }
 0x101   :  { %3078 = vmatprep.subr.bf16.mxu1 %v4158_v43  ;;  %v4231_v43 = vld [vmem:[%s5732_s1 + $0x8a0] ss:$8 sps:$4 sm:$0xff]  }
 0x102   :  { %2982 = vmatmul.mubr.bf16.vlgmr.msra.gmra.mxu0 %v709_v17  ;;  %v4239_v17 = vld [vmem:[%s5732_s1 + $0x894] ss:$8 sps:$4 sm:$0xff]  }
 0x103   :  { %3036 = vmatpush1.bf16.msra.mxu0 %v4153_v18  ;;  %3025 = vmatmul.mubr.bf16.vlgmr.msra.gmra.mxu1 %v710_v46  ;;  %v4251_v18 = vld [vmem:[%s5731_s0 + $0x14] ss:$23 sps:$4 sm:$0x77]   ;;  %v4257_v46 = vld [vmem:[%s5731_s0 + $0x70] ss:$23 sps:$4 sm:$0x77]  }
 0x104   :  { %3079 = vmatpush1.bf16.msra.mxu1 %v4156_v19  ;;  %3037 = vmatprep.subr.bf16.mxu0 %v4161_v47  ;;  %v4254_v19 = vld [vmem:[%s5731_s0 + $0x42] ss:$23 sps:$4 sm:$0x77]   ;;  %v4260_v47 = vld [vmem:[%s5731_s0 + $0x9e] ss:$23 sps:$4 sm:$0x77]  }
 0x105   :  { %3080 = vmatprep.subr.bf16.mxu1 %v4164_v48  ;;  %3067 = vmatprep.mubr.bf16.mxu0 %v847_v50  ;;  %v4242_v48 = vld [vmem:[%s5732_s1 + $0x994] ss:$8 sps:$4 sm:$0xff]   ;;  %v783_v50 = vcombine.low %v5287_v32, %v5290_v33  ;;  %v5528_v32 = vrot.slane %v4254_v19, %v4538_v53  ;;  %v5531_v33 = vrot.slane %v4257_v46, %v4538_v53  ;;  %v4285_v46 = vld [vmem:[%s5732_s1 + $0xaf0] ss:$8 sps:$4 sm:$0xff]  }
 0x106   :  { %3110 = vmatprep.mubr.bf16.mxu1 %v848_v54  ;;  %v5519_v54 = vrot.slane %v4251_v18, %v4538_v53  ;;  %v4282_v18 = vld [vmem:[%s5732_s1 + $0xa00] ss:$8 sps:$4 sm:$0xff]   ;;  %v4287_v19 = vld [vmem:[%s5732_s1 + $0xaf4] ss:$8 sps:$4 sm:$0xff]  }
 0x107   :  { %3038 = vmatpush1.bf16.msra.mxu0 %v4159_v49  ;;  %v779_v49 = vcombine.low %v5281_v30, %v5284_v31  ;;  %v4240_v30 = vld [vmem:[%s5732_s1 + $0x990] ss:$8 sps:$4 sm:$0xff]   ;;  %v4245_v31 = vld [vmem:[%s5732_s1 + $0x884] ss:$8 sps:$4 sm:$0xff]  }
 0x108   :  { %3081 = vmatpush1.bf16.msra.mxu1 %v4162_v51  ;;  %3039 = vmatprep.subr.bf16.mxu0 %v4167_v52  ;;  %v406_v51 = vld [vmem:[%s5732_s1 + $0xb40] sm:$0x33]  ;;  %v4237_v52 = vld [vmem:[%s5732_s1 + $0x890] ss:$8 sps:$4 sm:$0xff]  }
 0x109   :  { %3082 = vmatprep.subr.bf16.mxu1 %v4170_v55  ;;  %v4356_v55 = vmov 65535  }
 0x10b   :  { %3040 = vmatpush1.bf16.msra.mxu0 %v4165_v56  ;;  %v2683_v56 = vsel %vm2681_vm0, 4294967295, %v4356_v55  ;;  %v4302_v55 = vld [vmem:[%s5732_s1 + $0xab0] ss:$8 sps:$4 sm:$0xff]  }
 0x10c   :  { %3083 = vmatpush1.bf16.msra.mxu1 %v4168_v57  ;;  %3041 = vmatprep.subr.bf16.mxu0 %v4173_v58  ;;  %v5534_v57 = vrot.slane %v4260_v47, %v4538_v53  ;;  %v4248_v58 = vld [vmem:[%s5732_s1 + $0x984] ss:$8 sps:$4 sm:$0xff]  }
 0x10d   :  { %3084 = vmatprep.subr.bf16.mxu1 %v4176_v59  ;;  %v793_v59 = vrot.slane %v779_v49, %v4538_v53  ;;  %v4290_v47 = vld [vmem:[%s5732_s1 + $0xae4] ss:$8 sps:$4 sm:$0xff]   ;;  %v4293_v49 = vld [vmem:[%s5732_s1 + $0xad4] ss:$8 sps:$4 sm:$0xff]  }
 0x10f   :  { %3042 = vmatpush1.bf16.msra.mxu0 %v4171_v60  ;;  %v3725_v60 = vcombine.high %v406_v51, %v406_v51 }
 0x110   :  { %3085 = vmatpush1.bf16.msra.mxu1 %v4174_v61  ;;  %3043 = vmatprep.subr.bf16.mxu0 %v4179_v62  ;;  %v821_v61 = vrot.slane %v783_v50, %v4538_v53  ;;  %v2684_v62 = vsel %vm2682_vm1, %v2683_v56, 0  ;;  %v4291_v50 = vld [vmem:[%s5732_s1 + $0xad0] ss:$8 sps:$4 sm:$0xff]   ;;  %v4310_v56 = vld [vmem:[%s5732_s1 + $0xaa4] ss:$8 sps:$4 sm:$0xff]  }
 0x111   :  { %3086 = vmatprep.subr.bf16.mxu1 %v4182_v63  ;;  %v782_v63 = vcombine.high %v5519_v54, %v5528_v32 }
 0x113   :  { %3044 = vmatpush1.bf16.msra.mxu0 %v4177_v2  ;;  %v786_v2 = vcombine.high %v5531_v33, %v5534_v57 }
 0x114   :  { %3087 = vmatpush1.bf16.msra.mxu1 %v4180_v3  ;;  %3045 = vmatprep.subr.bf16.mxu0 %v4185_v10  ;;  %v4243_v3 = vld [vmem:[%s5732_s1 + $0x880] ss:$8 sps:$4 sm:$0xff]  }
 0x115   :  { %3088 = vmatprep.subr.bf16.mxu1 %v4188_v4  ;;  %v4246_v10 = vld [vmem:[%s5732_s1 + $0x980] ss:$8 sps:$4 sm:$0xff]   ;;  %v4263_v4 = vld [vmem:[%s5732_s1 + $0xa74] ss:$8 sps:$4 sm:$0xff]  }
 0x117   :  { %3046 = vmatpush1.bf16.msra.mxu0 %v4183_v5  ;;  %v3724_v5 = vcombine.low %v406_v51, %v406_v51  ;;  %v4298_v51 = vld [vmem:[%s5732_s1 + $0xac4] ss:$8 sps:$4 sm:$0xff]  }
 0x118   :  { %3089 = vmatpush1.bf16.msra.mxu1 %v4186_v6  ;;  %3047 = vmatprep.subr.bf16.mxu0 %v4191_v7  ;;  %v2689_v6 = vand.u32 %v3725_v60, %v2684_v62  ;;  %v843_v7 = vcombine.low %v793_v59, %v821_v61  ;;  %v4324_v60 = vld [vmem:[%s5734_s3 + $0x30] sm:$0xff]  }
 0x119   :  { %3090 = vmatprep.subr.bf16.mxu1 %v4194_v11  ;;  %v814_v11 = vrot.slane %v782_v63, %v4538_v53  ;;  %v4327_v63 = vld [vmem:[%s5734_s3 + $0x18] sm:$0xff]  }
 0x11b   :  { %3048 = vmatpush1.bf16.msra.mxu0 %v4189_v12  ;;  %v842_v12 = vrot.slane %v786_v2, %v4538_v53  ;;  %v4328_v2 = vld [vmem:[%s5734_s3 + $0x10] sm:$0xff]  }
 0x11c   :  { %3091 = vmatpush1.bf16.msra.mxu1 %v4192_v13  ;;  %3049 = vmatprep.subr.bf16.mxu0 %v4197_v14  ;;  %v4261_v13 = vld [vmem:[%s5732_s1 + $0xa70] ss:$8 sps:$4 sm:$0xff]   ;;  %v844_v14 = vcombine.high %v793_v59, %v821_v61  ;;  %v4325_v61 = vld [vmem:[%s5734_s3 + $0x28] sm:$0xff]  }
 0x11d   :  { %3092 = vmatprep.subr.bf16.mxu1 %v4200_v15  ;;  %v4266_v15 = vld [vmem:[%s5732_s1 + $0xa64] ss:$8 sps:$4 sm:$0xff]   ;;  %v4323_v59 = vld [vmem:[%s5734_s3 + $0x38] sm:$0xff]  }
 0x11f   :  { %3050 = vmatpush1.bf16.msra.mxu0 %v4195_v20  ;;  %v2686_v20 = vand.u32 %v3724_v5, %v2684_v62  ;;  %v4326_v62 = vld [vmem:[%s5734_s3 + $0x20] sm:$0xff]  }
 0x120   :  { %3093 = vmatpush1.bf16.msra.mxu1 %v4198_v21  ;;  %3051 = vmatprep.subr.bf16.mxu0 %v4203_v22  ;;  %v4301_v21 = vld [vmem:[%s5732_s1 + $0xb34] ss:$8 sps:$4 sm:$0xff]   ;;  %v849_v22 = vcombine.low %v814_v11, %v842_v12  ;;  %v4332_v5 = vld [vmem:[%s5734_s3 + $0x40] sm:$0xff]  }
 0x121   :  { %3094 = vmatprep.subr.bf16.mxu1 %v4206_v23  ;;  %v4264_v23 = vld [vmem:[%s5732_s1 + $0xa60] ss:$8 sps:$4 sm:$0xff]  }
 0x123   :  { %3052 = vmatpush2.bf16.msra.mxu0 %v4201_v24  ;;  %v4269_v24 = vld [vmem:[%s5732_s1 + $0xa54] ss:$8 sps:$4 sm:$0xff]  }
 0x124   :  { %3095 = vmatpush2.bf16.msra.mxu1 %v4204_v25  ;;  %3053 = vmatprep.subr.bf16.mxu0 %v4209_v26  ;;  %v4299_v25 = vld [vmem:[%s5732_s1 + $0xb30] ss:$8 sps:$4 sm:$0xff]   ;;  %v4307_v26 = vld [vmem:[%s5732_s1 + $0xb24] ss:$8 sps:$4 sm:$0xff]  }
 0x125   :  { %3096 = vmatprep.subr.bf16.mxu1 %v4212_v27  ;;  %v4357_v27 = vmov 0  }
 0x127   :  { %3054 = vmatpush2.bf16.msra.mxu0 %v4207_v28  ;;  %v4267_v28 = vld [vmem:[%s5732_s1 + $0xa50] ss:$8 sps:$4 sm:$0xff]  }
 0x128   :  { %3097 = vmatpush2.bf16.msra.mxu1 %v4210_v29  ;;  %3055 = vmatprep.subr.bf16.mxu0 %v4215_v34  ;;  %v4272_v29 = vld [vmem:[%s5732_s1 + $0xa44] ss:$8 sps:$4 sm:$0xff]   ;;  %v4305_v34 = vld [vmem:[%s5732_s1 + $0xb20] ss:$8 sps:$4 sm:$0xff]  }
 0x129   :  { %3098 = vmatprep.subr.bf16.mxu1 %v4218_v35  ;;  %v4313_v35 = vld [vmem:[%s5732_s1 + $0xb14] ss:$8 sps:$4 sm:$0xff]  }
 0x12b   :  { %3056 = vmatpush2.bf16.msra.mxu0 %v4213_v36  ;;  %v4270_v36 = vld [vmem:[%s5732_s1 + $0xa40] ss:$8 sps:$4 sm:$0xff]  }
 0x12c   :  { %3099 = vmatpush2.bf16.msra.mxu1 %v4216_v37  ;;  %3057 = vmatprep.subr.bf16.mxu0 %v4221_v38  ;;  %v781_v37 = vcombine.low %v5519_v54, %v5528_v32  ;;  %v785_v38 = vcombine.low %v5531_v33, %v5534_v57  ;;  %v4304_v54 = vld [vmem:[%s5732_s1 + $0xab4] ss:$8 sps:$4 sm:$0xff]   ;;  %v4314_v32 = vld [vmem:[%s5732_s1 + $0xa90] ss:$8 sps:$4 sm:$0xff]   ;;  %v4322_v33 = vld [vmem:[%s5732_s1 + $0xa84] ss:$8 sps:$4 sm:$0xff]  }
 0x12d   :  { %3100 = vmatprep.subr.bf16.mxu1 %v4224_v39  ;;  %v4275_v39 = vld [vmem:[%s5732_s1 + $0xa34] ss:$8 sps:$4 sm:$0xff]   ;;  %v4320_v57 = vld [vmem:[%s5732_s1 + $0xa80] ss:$8 sps:$4 sm:$0xff]  }
 0x12f   :  { %3058 = vmatpush2.bf16.msra.mxu0 %v4219_v0  ;;  %v4311_v0 = vld [vmem:[%s5732_s1 + $0xb10] ss:$8 sps:$4 sm:$0xff]  }
 0x130   :  { %3101 = vmatpush2.bf16.msra.mxu1 %v4222_v1  ;;  %3059 = vmatprep.subr.bf16.mxu0 %v4227_v8  ;;  %v4319_v1 = vld [vmem:[%s5732_s1 + $0xb04] ss:$8 sps:$4 sm:$0xff]   ;;  %v4273_v8 = vld [vmem:[%s5732_s1 + $0xa30] ss:$8 sps:$4 sm:$0xff]  }
 0x131   :  { %3102 = vmatprep.subr.bf16.mxu1 %v4230_v9  ;;  %v800_v9 = vrot.slane %v781_v37, %v4538_v53 }
 0x133   :  { %3060 = vmatpush2.bf16.msra.mxu0 %v4225_v40  ;;  %v828_v40 = vrot.slane %v785_v38, %v4538_v53  ;;  %v4281_v53 = vld [vmem:[%s5732_s1 + $0xa14] ss:$8 sps:$4 sm:$0xff]   ;;  %v415_v38 = vsub.s32 1, %v4517_v45 }
 0x134   :  { %3103 = vmatpush2.bf16.msra.mxu1 %v4228_v41  ;;  %3061 = vmatprep.subr.bf16.mxu0 %v4233_v42  ;;  %v4278_v41 = vld [vmem:[%s5732_s1 + $0xa24] ss:$8 sps:$4 sm:$0xff]   ;;  %v4317_v42 = vld [vmem:[%s5732_s1 + $0xb00] ss:$8 sps:$4 sm:$0xff]  }
 0x135   :  { %3104 = vmatprep.subr.bf16.mxu1 %v4236_v44  ;;  %v846_v44 = vcombine.high %v800_v9, %v828_v40 }
 0x137   :  { %3062 = vmatpush2.bf16.msra.mxu0 %v4231_v43  ;;  %v4276_v43 = vld [vmem:[%s5732_s1 + $0xa20] ss:$8 sps:$4 sm:$0xff]  }
 0x138   :  { %3105 = vmatpush2.bf16.msra.mxu1 %v4234_v16  ;;  %3063 = vmatprep.subr.bf16.mxu0 %v4239_v17  ;;  %v4279_v16 = vld [vmem:[%s5732_s1 + $0xa10] ss:$8 sps:$4 sm:$0xff]   ;;  %v4284_v17 = vld [vmem:[%s5732_s1 + $0xa04] ss:$8 sps:$4 sm:$0xff]  }
 0x139   :  { %3106 = vmatprep.subr.bf16.mxu1 %v4242_v48  ;;  %v4288_v48 = vld [vmem:[%s5732_s1 + $0xae0] ss:$8 sps:$4 sm:$0xff]  }
 0x13b   :  { %3064 = vmatpush2.bf16.msra.mxu0 %v4237_v52  ;;  %v4296_v52 = vld [vmem:[%s5732_s1 + $0xac0] ss:$8 sps:$4 sm:$0xff]  }
 0x13c   :  { %3107 = vmatpush2.bf16.msra.mxu1 %v4240_v30  ;;  %3065 = vmatprep.subr.bf16.mxu0 %v4245_v31  ;;  %v4308_v30 = vld [vmem:[%s5732_s1 + $0xaa0] ss:$8 sps:$4 sm:$0xff]   ;;  %v4316_v31 = vld [vmem:[%s5732_s1 + $0xa94] ss:$8 sps:$4 sm:$0xff]  }
 0x13d   :  { %3108 = vmatprep.subr.bf16.mxu1 %v4248_v58  ;;  %v845_v58 = vcombine.low %v800_v9, %v828_v40 }
 0x13f   :  { %3066 = vmatpush2.bf16.msra.mxu0 %v4243_v3  ;;  %v4329_v3 = vld [vmem:[%s5734_s3 + $0x8] sm:$0xff]  }
 0x140   :  { %3109 = vmatpush2.bf16.msra.mxu1 %v4246_v10  ;;  %3121 = vmatprep.subr.bf16.mxu0 %v4263_v4  ;;  %v4330_v10 = vld [vmem:[%s5734_s3] sm:$0xff]   ;;  %v4331_v4 = vld [vmem:[%s5734_s3 + $0x48] sm:$0xff]  }
 0x141   :  { %3170 = vmatprep.subr.bf16.mxu1 %v2689_v6  ;;  %v2768_v6 = vpop.f32.mrf.mxu1 }
 0x142   :  { %3068 = vmatmul.mubr.bf16.vlgmr.msra.gmra.mxu0 %v843_v7  ;;  %v2725_v7 = vpop.f32.mrf.mxu0 }
 0x143   :  { %3122 = vmatpush1.bf16.msra.mxu0 %v4261_v13  ;;  %3111 = vmatmul.mubr.bf16.vlgmr.msra.gmra.mxu1 %v844_v14  ;;  %v2770_v11 = vpop.f32.mrf.mxu1 }
 0x144   :  { %3123 = vmatprep.subr.bf16.mxu0 %v4266_v15  ;;  %3171 = vmatpush1.bf16.msra.mxu1 %v2686_v20  ;;  %v2727_v12 = vpop.f32.mrf.mxu0 }
 0x145   :  { %3172 = vmatprep.subr.bf16.mxu1 %v4301_v21  ;;  %3196 = vmatprep.mubr.bf16.mxu1 %v4357_v27  ;;  %v2772_v13 = vpop.f32.mrf.mxu1 }
 0x146   :  { %3153 = vmatprep.mubr.bf16.mxu0 %v849_v22  ;;  %v2729_v14 = vpop.f32.mrf.mxu0 }
 0x147   :  { %3124 = vmatpush1.bf16.msra.mxu0 %v4264_v23  ;;  %v2774_v15 = vpop.f32.mrf.mxu1 }
 0x148   :  { %3125 = vmatprep.subr.bf16.mxu0 %v4269_v24  ;;  %3173 = vmatpush1.bf16.msra.mxu1 %v4299_v25  ;;  %v2731_v21 = vpop.f32.mrf.mxu0 }
 0x149   :  { %3174 = vmatprep.subr.bf16.mxu1 %v4307_v26  ;;  %v2854_v20 = vpop.f32.mrf.mxu1 }
 0x14a   :  { %v2811_v22 = vpop.f32.mrf.mxu0 }
 0x14b   :  { %3126 = vmatpush1.bf16.msra.mxu0 %v4267_v28  ;;  %v2856_v23 = vpop.f32.mrf.mxu1 }
 0x14c   :  { %3127 = vmatprep.subr.bf16.mxu0 %v4272_v29  ;;  %3175 = vmatpush1.bf16.msra.mxu1 %v4305_v34  ;;  %v2813_v24 = vpop.f32.mrf.mxu0 }
 0x14d   :  { %3176 = vmatprep.subr.bf16.mxu1 %v4313_v35  ;;  %v2858_v25 = vpop.f32.mrf.mxu1 }
 0x14e   :  { %v2815_v26 = vpop.f32.mrf.mxu0 }
 0x14f   :  { %3128 = vmatpush1.bf16.msra.mxu0 %v4270_v36 }
 0x150   :  { %3129 = vmatprep.subr.bf16.mxu0 %v4275_v39  ;;  %3177 = vmatpush1.bf16.msra.mxu1 %v4311_v0  ;;  %v2817_v29 = vpop.f32.mrf.mxu0  ;;  %v407_v39 = vld [vmem:[%s5733_s2] sm:$0x3]  ;;  %v411_v0 = vsub.s32 0, %v4517_v45 }
 0x151   :  { %3178 = vmatprep.subr.bf16.mxu1 %v4319_v1  ;;  %v416_v40 = vrot.slane %v407_v39, %v415_v38 }
 0x153   :  { %3130 = vmatpush1.bf16.msra.mxu0 %v4273_v8 }
 0x154   :  { %3131 = vmatprep.subr.bf16.mxu0 %v4278_v41  ;;  %3179 = vmatpush1.bf16.msra.mxu1 %v4317_v42  ;;  %v412_v41 = vrot.slane %v407_v39, %v411_v0 }
 0x155   :  { %3304 = vmatprep.subr.bf16.mxu1 %v4357_v27 }
 0x157   :  { %3132 = vmatpush1.bf16.msra.mxu0 %v4276_v43  ;;  %3726 = vmatmul.mubr.msk.bf16.vlgmr.msra.gmra.mxu1 %vm2677_vm2, %v846_v44 }
 0x158   :  { %3133 = vmatprep.subr.bf16.mxu0 %v4281_v53  ;;  %3305 = vmatpush1.bf16.msra.mxu1 %v4323_v59  ;;  %v2728_v53 = vadd.f32 %v2727_v12, %v416_v40 }
 0x159   :  { %3306 = vmatprep.subr.bf16.mxu1 %v4357_v27 }
 0x15b   :  { %3134 = vmatpush1.bf16.msra.mxu0 %v4279_v16  ;;  %v2726_v16 = vadd.f32 %v2725_v7, %v412_v41 }
 0x15c   :  { %3135 = vmatprep.subr.bf16.mxu0 %v4284_v17  ;;  %3307 = vmatpush1.bf16.msra.mxu1 %v4324_v60  ;;  %v2730_v17 = vadd.f32 %v2729_v14, %v412_v41 }
 0x15d   :  { %3308 = vmatprep.subr.bf16.mxu1 %v4357_v27 }
 0x15f   :  { %3136 = vmatpush1.bf16.msra.mxu0 %v4282_v18 }
 0x160   :  { %3137 = vmatprep.subr.bf16.mxu0 %v4287_v19  ;;  %3309 = vmatpush1.bf16.msra.mxu1 %v4325_v61 }
 0x161   :  { %3310 = vmatprep.subr.bf16.mxu1 %v4357_v27 }
 0x163   :  { %3138 = vmatpush2.bf16.msra.mxu0 %v4285_v46  ;;  %v2771_v46 = vadd.f32 %v2770_v11, %v2728_v53 }
 0x164   :  { %3139 = vmatprep.subr.bf16.mxu0 %v4290_v47  ;;  %3311 = vmatpush1.bf16.msra.mxu1 %v4326_v62  ;;  %v2732_v47 = vadd.f32 %v2731_v21, %v416_v40 }
 0x165   :  { %3312 = vmatprep.subr.bf16.mxu1 %v4357_v27 }
 0x167   :  { %3140 = vmatpush2.bf16.msra.mxu0 %v4288_v48  ;;  %v2769_v48 = vadd.f32 %v2768_v6, %v2726_v16 }
 0x168   :  { %3141 = vmatprep.subr.bf16.mxu0 %v4293_v49  ;;  %3313 = vmatpush1.bf16.msra.mxu1 %v4327_v63  ;;  %v2773_v49 = vadd.f32 %v2772_v13, %v2730_v17 }
 0x169   :  { %3314 = vmatprep.subr.bf16.mxu1 %v4357_v27 }
 0x16b   :  { %3142 = vmatpush2.bf16.msra.mxu0 %v4291_v50  ;;  %v2814_v50 = vadd.f32 %v2813_v24, %v2771_v46 }
 0x16c   :  { %3143 = vmatprep.subr.bf16.mxu0 %v4298_v51  ;;  %3315 = vmatpush1.bf16.msra.mxu1 %v4328_v2  ;;  %v2812_v51 = vadd.f32 %v2811_v22, %v2769_v48 }
 0x16d   :  { %3316 = vmatprep.subr.bf16.mxu1 %v4357_v27 }
 0x16f   :  { %3144 = vmatpush2.bf16.msra.mxu0 %v4296_v52 }
 0x170   :  { %3145 = vmatprep.subr.bf16.mxu0 %v4304_v54  ;;  %3317 = vmatpush1.bf16.msra.mxu1 %v4329_v3  ;;  %v2775_v54 = vadd.f32 %v2774_v15, %v2732_v47 }
 0x171   :  { %3318 = vmatprep.subr.bf16.mxu1 %v4357_v27 }
 0x173   :  { %3146 = vmatpush2.bf16.msra.mxu0 %v4302_v55  ;;  %v2816_v55 = vadd.f32 %v2815_v26, %v2773_v49 }
 0x174   :  { %3147 = vmatprep.subr.bf16.mxu0 %v4310_v56  ;;  %3319 = vmatpush1.bf16.msra.mxu1 %v4330_v10 }
 0x175   :  { %3332 = vmatprep.subr.bf16.mxu1 %v4357_v27 }
 0x177   :  { %3148 = vmatpush2.bf16.msra.mxu0 %v4308_v30  ;;  %v2857_v30 = vadd.f32 %v2856_v23, %v2814_v50 }
 0x178   :  { %3149 = vmatprep.subr.bf16.mxu0 %v4316_v31  ;;  %3333 = vmatpush2.bf16.msra.mxu1 %v4331_v4  ;;  %v2818_v31 = vadd.f32 %v2817_v29, %v2775_v54 }
 0x179   :  { %3334 = vmatprep.subr.bf16.mxu1 %v4357_v27  ;;  %v2860_v27 = vpop.f32.mrf.mxu1 }
 0x17a   :  { %v2861_v62 = vadd.f32 %v2860_v27, %v2818_v31 }
 0x17b   :  { %3150 = vmatpush2.bf16.msra.mxu0 %v4314_v32  ;;  %v2855_v32 = vadd.f32 %v2854_v20, %v2812_v51 }
 0x17c   :  { %3151 = vmatprep.subr.bf16.mxu0 %v4322_v33  ;;  %3335 = vmatpush2.bf16.msra.mxu1 %v4332_v5 }
 0x17f   :  { %3152 = vmatpush2.bf16.msra.mxu0 %v4320_v57  ;;  %v2859_v57 = vadd.f32 %v2858_v25, %v2816_v55 }
 0x182   :  { %3154 = vmatmul.mubr.bf16.vlgmr.msra.gmra.mxu0 %v845_v58  ;;  %v2897_v34 = vpop.f32.mrf.mxu0 }
 0x183   :  { %v2940_v28 = vpop.f32.mrf.mxu1  ;;  %v2898_v59 = vadd.f32 %v2897_v34, %v2855_v32 }
 0x184   :  { %v2899_v36 = vpop.f32.mrf.mxu0 }
 0x185   :  { %v2942_v35 = vpop.f32.mrf.mxu1  ;;  %v2900_v58 = vadd.f32 %v2899_v36, %v2857_v30  ;;  %v2941_v10 = vadd.f32 %v2940_v28, %v2898_v59 }
 0x186   :  { %v2901_v1 = vpop.f32.mrf.mxu0 }
 0x187   :  { %v2944_v37 = vpop.f32.mrf.mxu1  ;;  %v2902_v63 = vadd.f32 %v2901_v1, %v2859_v57  ;;  %v2943_v2 = vadd.f32 %v2942_v35, %v2900_v58 }
 0x188   :  { %v2903_v42 = vpop.f32.mrf.mxu0 }
 0x189   :  { %v2946_v8 = vpop.f32.mrf.mxu1  ;;  %v2904_v3 = vadd.f32 %v2903_v42, %v2861_v62  ;;  %v2945_v6 = vadd.f32 %v2944_v37, %v2902_v63 }
 0x18b   :  { %v2947_v12 = vadd.f32 %v2946_v8, %v2904_v3 }
 0x1c2   :  { %v2983_v43 = vpop.f32.mrf.mxu0 }
 0x1c3   :  { %v3026_v9 = vpop.f32.mrf.mxu1  ;;  %v2984_v11 = vadd.f32 %v2983_v43, %v2941_v10 }
 0x1c4   :  { %v2985_v18 = vpop.f32.mrf.mxu0 }
 0x1c5   :  { %v3028_v44 = vpop.f32.mrf.mxu1  ;;  %v2986_v7 = vadd.f32 %v2985_v18, %v2943_v2  ;;  %v3027_v22 = vadd.f32 %v3026_v9, %v2984_v11 }
 0x1c6   :  { %v2987_v45 = vpop.f32.mrf.mxu0 }
 0x1c7   :  { %v3030_v19 = vpop.f32.mrf.mxu1  ;;  %v2988_v13 = vadd.f32 %v2987_v45, %v2945_v6  ;;  %v3029_v20 = vadd.f32 %v3028_v44, %v2986_v7  ;;  %v3727_v45 = vld [vmem:[%s5735_s4] ss:$0 sm:$0xff] }
 0x1c8   :  { %v2989_v33 = vpop.f32.mrf.mxu0 }
 0x1c9   :  { %v3032_v52 = vpop.f32.mrf.mxu1  ;;  %v2990_v21 = vadd.f32 %v2989_v33, %v2947_v12  ;;  %v3031_v24 = vadd.f32 %v3030_v19, %v2988_v13 }
 0x1cb   :  { %v3033_v29 = vadd.f32 %v3032_v52, %v2990_v21 }
 0x202   :  { %v3069_v60 = vpop.f32.mrf.mxu0 }
 0x203   :  { %v3112_v56 = vpop.f32.mrf.mxu1  ;;  %v3070_v26 = vadd.f32 %v3069_v60, %v3027_v22 }
 0x204   :  { %v3071_v4 = vpop.f32.mrf.mxu0 }
 0x205   :  { %v3114_v61 = vpop.f32.mrf.mxu1  ;;  %v3072_v25 = vadd.f32 %v3071_v4, %v3029_v20  ;;  %v3113_v38 = vadd.f32 %v3112_v56, %v3070_v26 }
 0x206   :  { %v3073_v14 = vpop.f32.mrf.mxu0 }
 0x207   :  { %v3116_v5 = vpop.f32.mrf.mxu1  ;;  %v3074_v34 = vadd.f32 %v3073_v14, %v3031_v24  ;;  %v3115_v36 = vadd.f32 %v3114_v61, %v3072_v25 }
 0x208   :  { %v3075_v27 = vpop.f32.mrf.mxu0 }
 0x209   :  { %v3118_v15 = vpop.f32.mrf.mxu1  ;;  %v3076_v37 = vadd.f32 %v3075_v27, %v3033_v29  ;;  %v3117_v0 = vadd.f32 %v3116_v5, %v3074_v34 }
 0x20b   :  { %v3119_v42 = vadd.f32 %v3118_v15, %v3076_v37 }
 0x217   :  { %v3198_v23 = vpop.f32.mrf.mxu1 }
 0x219   :  { %v3200_v28 = vpop.f32.mrf.mxu1 }
 0x21b   :  { %v3202_v40 = vpop.f32.mrf.mxu1 }
 0x21d   :  { %v3204_v18 = vpop.f32.mrf.mxu1 }
 0x242   :  { %v3155_v35 = vpop.f32.mrf.mxu0 }
 0x243   :  { %v3156_v8 = vadd.f32 %v3155_v35, %v3113_v38 }
 0x244   :  { %v3157_v39 = vpop.f32.mrf.mxu0 }
 0x245   :  { %v3158_v1 = vadd.f32 %v3157_v39, %v3115_v36  ;;  %v3199_v17 = vadd.f32 %v3198_v23, %v3156_v8 }
 0x246   :  { %v3159_v41 = vpop.f32.mrf.mxu0 }
 0x247   :  { %v3160_v9 = vadd.f32 %v3159_v41, %v3117_v0  ;;  %v3201_v44 = vadd.f32 %v3200_v28, %v3158_v1  ;;  %v3207_v49 = vmax.f32 %v3199_v17, 0.0 }
 0x248   :  { %v3161_v43 = vpop.f32.mrf.mxu0 }
 0x249   :  { %v3203_v53 = vadd.f32 %v3202_v40, %v3160_v9  ;;  %v3162_v16 = vadd.f32 %v3161_v43, %v3119_v42  ;;  %v3208_v47 = vmax.f32 %v3201_v44, 0.0 }
 0x24b   :  { %v3205_v19 = vadd.f32 %v3204_v18, %v3162_v16  ;;  %v3209_v46 = vmax.f32 %v3203_v53, 0.0 }
 0x24d   :  { %v3210_v48 = vmax.f32 %v3205_v19, 0.0  ;;  %v3211_v51 = vpack.c.bf16 %v3209_v46, %v3207_v49 }
 0x24f   :  { %v3212_v50 = vpack.c.bf16 %v3210_v48, %v3208_v47 }
 0x251   :  { %3738 = vmatprep.mubr.msk.bf16.mxu1 %vm3300_vm3, %v3212_v50 }
 0x252   :  { %3337 = vmatmul.mubr.bf16.vlgmr.msra.gmra.mxu1 %v3211_v51 }
 0x312   :  { %v3338_v52 = vpop.f32.mrf.mxu1 }
 0x313   :  { %v3339_v54 = vadd.f32 %v3727_v45, %v3338_v52 }
 0x314   :  { %v3340_v55 = vpop.f32.mrf.mxu1 }
 0x315   :  { %3346 = vst.msk [vmem:[#allocation2] sm:$0xff] %vm3345_vm4, %v3339_v54 }
 0x316   :  { %v3341_v56 = vpop.f32.mrf.mxu1 }
 0x317   :  { %v3342_v30 = vadd.f32 %v3727_v45, %v3341_v56 }
 0x318   :  { %v3343_v31 = vpop.f32.mrf.mxu1 }
 0x319   :  { %3347 = vst.msk [vmem:[#allocation2 + $0x8] sm:$0xff] %vm3345_vm4, %v3342_v30 }
 0x31a   :  { %3352 = vsyncadd [#allocation3], 224  ;;  %s4358_s29 = smov [#allocation2]  }
 0x31b   :  { %s3353_s30 = sshll.u32 %s4358_s29, 4  ;;  %s3354_s30 = int_to_ptr.vmem [resolvable:$true] %s3353_s30 }
 0x31c   :  { %s4333_s6 = scalar_lea.vmem %s3354_s30, 32  ;;  %s4337_s7 = scalar_lea.vmem %s3354_s30, 256 }
 0x31d   :  { %p4334_p0 = scmp.ne.s32.totalorder %s3354_s30, %s4333_s6  ;;  %p4338_p1 = scmp.lt.s32.totalorder %s3354_s30, %s3354_s30 }
 0x31e   :  { %p4339_p2 = scmp.lt.s32.totalorder %s4337_s7, %s4333_s6 }
 0x320   :  { %p4340_p3 = por %p4339_p2, %p4338_p1 }
 0x322   :  { %p4341_p4 = pnand %p4340_p3, %p4334_p0 }
 0x324   :  { %4344 = shalt.err (!%p4341_p4)
}
 0x325   :  { %s4359_s4 = smov 32   ;;  %s4360_s8 = smov 2  }
 0x326   :  { %3359 = dma.vmem_to_hbm [thread:$0]  %s3354_s30, 32, %s5736_s5, [#allocation3], %s4359_s4, %s4359_s4, %s4360_s8  }
 0x327   :  { %4353 = dma.done.wait [#allocation3], 256  }
 0x328   :  { %4354 = vsyncadd [#allocation3], 4294967040 }
 0x329   :  { %3363 = vsyncpa [#allocation3], 1 }

</bundles_post_ra>
